<compile_context>
chip_gen: v6e
topology: v6e:2x2x1
jax: 0.10.0
libtpu: 0.0.40
codegen_flags: <defaults>
</compile_context>

<pallas_src>
import math

import jax
import jax.numpy as jnp
from jax.experimental import pallas as pl
from jax.experimental.pallas import tpu as pltpu


def _round_up(x: int, m: int) -> int:
    return ((x + m - 1) // m) * m


def _cdiv(a: int, b: int) -> int:
    return (a + b - 1) // b


def _sublane_multiple(dtype) -> int:
    # rows packed per vreg sublane group for this dtype
    return {4: 8, 2: 16, 1: 32}.get(jnp.dtype(dtype).itemsize, 8)


def _weight_tiles(in_dim: int, out_dim: int):
    # TN / TK depend only on the weight shape -> the weight can be padded once.
    TN = min(512, _round_up(out_dim, 128))
    TK = min(1024, _round_up(in_dim, 128))
    return TK, TN


# ---------------------------------------------------------------------------
# Kernels
# ---------------------------------------------------------------------------
def _linear_acc_kernel(x_ref, w_ref, b_ref, o_ref, acc_ref):
    # x_ref:  (TM, TK)  activations tile (compute dtype)
    # w_ref:  (TK, TN)  pre-transposed weight tile (compute dtype), lane-dense N
    # b_ref:  (1,  TN)  f32 bias tile, K-invariant
    # o_ref:  (TM, TN)  output tile (low-precision dtype)
    # acc_ref:(TM, TN)  f32 VMEM accumulator
    k = pl.program_id(2)

    @pl.when(k == 0)
    def _():
        acc_ref[...] = jnp.zeros_like(acc_ref)

    acc_ref[...] += jnp.dot(x_ref[...], w_ref[...],
                            preferred_element_type=jnp.float32)

    @pl.when(k == pl.num_programs(2) - 1)
    def _():
        o_ref[...] = (acc_ref[...] + b_ref[...]).astype(o_ref.dtype)


def _linear_f32out_kernel(x_ref, w_ref, b_ref, o_ref):
    # f32 output: accumulate directly into the resident output block
    # (its block index ignores k) -- no scratch, no extra VMEM copy.
    k = pl.program_id(2)

    @pl.when(k == 0)
    def _():
        o_ref[...] = jnp.broadcast_to(b_ref[...], o_ref.shape)

    o_ref[...] += jnp.dot(x_ref[...], w_ref[...],
                          preferred_element_type=jnp.float32)


# ---------------------------------------------------------------------------
# Parameter prep (one-time) + forward
# ---------------------------------------------------------------------------
def prepare_linear_norm_params(weight, bias=None, *, compute_dtype=jnp.bfloat16):
    """One-time prep: transpose W to (in_dim, out_dim), cast to the MXU compute
    dtype and pad to the tile grid. Do this at init, not per forward call."""
    out_dim, in_dim = weight.shape
    TK, TN = _weight_tiles(in_dim, out_dim)
    k_p, n_p = _round_up(in_dim, TK), _round_up(out_dim, TN)

    w_t = jnp.asarray(weight).T.astype(compute_dtype)          # (in_dim, out_dim)
    if (k_p, n_p) != (in_dim, out_dim):
        w_t = jnp.pad(w_t, ((0, k_p - in_dim), (0, n_p - out_dim)))

    if bias is None:
        b = jnp.zeros((out_dim,), jnp.float32)
    else:
        b = jnp.asarray(bias).astype(jnp.float32)
    b2 = b.reshape(1, out_dim)
    if n_p != out_dim:
        b2 = jnp.pad(b2, ((0, 0), (0, n_p - out_dim)))

    return {"w_t": w_t, "b2": b2, "in_dim": in_dim, "out_dim": out_dim,
            "compute_dtype": jnp.dtype(compute_dtype)}


def linear_norm_apply(x, params, *, use_pallas=None):
    """y = x @ W^T + b with pre-prepared params (see prepare_linear_norm_params)."""
    w_t, b2 = params["w_t"], params["b2"]
    in_dim, out_dim = params["in_dim"], params["out_dim"]
    cdt = params["compute_dtype"]
    assert x.shape[-1] == in_dim

    lead = x.shape[:-1]
    m = int(math.prod(lead)) if lead else 1
    out_dtype = x.dtype
    k_p, n_p = w_t.shape
    TK, TN = _weight_tiles(in_dim, out_dim)

    # --- M tile: packed-sublane aligned; split so >=2 parallel tiles exist
    #     (keeps both v7x TensorCores busy) when the problem allows it.
    sub = _sublane_multiple(cdt)
    TM = min(512, _round_up(m, sub))
    if _cdiv(m, TM) * _cdiv(out_dim, TN) < 2 and m >= 2 * sub:
        TM = _round_up(_cdiv(m, 2), sub)
    m_p = _round_up(m, TM)
    grid = (m_p // TM, n_p // TN, k_p // TK)

    # Tiny problems: launch + ~0.35us/grid-step overhead dominates -> let XLA fuse.
    if use_pallas is None:
        use_pallas = (m * in_dim * out_dim) >= 4 * (256 ** 3)

    x2 = x.reshape(m, in_dim).astype(cdt)

    if not use_pallas:
        y = jnp.dot(x2, w_t[:in_dim, :out_dim],
                    preferred_element_type=jnp.float32)
        y = (y + b2[0, :out_dim]).astype(out_dtype)
        return y.reshape(*lead, out_dim)

    if (m_p, k_p) != (m, in_dim):
        # zero-pad K (required: padded K lanes must not corrupt the accumulator)
        x2 = jnp.pad(x2, ((0, m_p - m), (0, k_p - in_dim)))

    out_is_f32 = jnp.dtype(out_dtype) == jnp.dtype(jnp.float32)
    kernel = _linear_f32out_kernel if out_is_f32 else _linear_acc_kernel
    scratch = [] if out_is_f32 else [pltpu.VMEM((TM, TN), jnp.float32)]

    flops = 2 * m_p * n_p * k_p
    bytes_accessed = (
        (n_p // TN) * x2.size * x2.dtype.itemsize          # x re-streamed per N pass
        + (m_p // TM) * w_t.size * w_t.dtype.itemsize      # W re-streamed per M pass
        + b2.size * 4
        + m_p * n_p * jnp.dtype(out_dtype).itemsize)

    # double-buffered x/W/bias/out tiles (+ f32 acc); ~8 MiB at max tiling
    est_vmem = (2 * (TM * TK * x2.dtype.itemsize
                     + TK * TN * w_t.dtype.itemsize
                     + TN * 4
                     + TM * TN * jnp.dtype(out_dtype).itemsize)
                + TM * TN * 4)
    vmem_limit = int(min(48 << 20, max(24 << 20, 2 * est_vmem)))

    out = pl.pallas_call(
        kernel,
        out_shape=jax.ShapeDtypeStruct((m_p, n_p), out_dtype),
        grid_spec=pltpu.PrefetchScalarGridSpec(
            num_scalar_prefetch=0,
            grid=grid,
            in_specs=[
                pl.BlockSpec((TM, TK), lambda i, j, k: (i, k)),   # x
                pl.BlockSpec((TK, TN), lambda i, j, k: (k, j)),   # W^T (lane-dense N)
                pl.BlockSpec((1, TN), lambda i, j, k: (0, j)),    # bias, K-invariant
            ],
            out_specs=pl.BlockSpec((TM, TN), lambda i, j, k: (i, j)),
            scratch_shapes=scratch,
        ),
        compiler_params=pltpu.CompilerParams(
            dimension_semantics=("parallel", "parallel", "arbitrary"),
            vmem_limit_bytes=vmem_limit),
        cost_estimate=pl.CostEstimate(flops=flops,
                                      bytes_accessed=bytes_accessed,
                                      transcendentals=0),
    )(x2, w_t, b2)

    out = out[:m, :out_dim]
    return out.reshape(*lead, out_dim)


def linear_norm_forward(x, weight, bias=None, *, compute_dtype=jnp.bfloat16,
                        use_pallas=None):
    """Convenience wrapper: PyTorch-layout weight (out_dim, in_dim)."""
    params = prepare_linear_norm_params(weight, bias, compute_dtype=compute_dtype)
    return linear_norm_apply(x, params, use_pallas=use_pallas)


def init_linear_norm_params(key, in_dim, out_dim, w_init_gain="linear",
                            dtype=jnp.float32):
    """Xavier-uniform weight (torch.nn.init.calculate_gain) + torch-default bias."""
    gain = {"linear": 1.0, "relu": math.sqrt(2.0),
            "tanh": 5.0 / 3.0, "sigmoid": 1.0}[w_init_gain]
    k_w, k_b = jax.random.split(key)
    limit_w = gain * math.sqrt(6.0 / (in_dim + out_dim))
    weight = jax.random.uniform(k_w, (out_dim, in_dim), dtype,
                                minval=-limit_w, maxval=limit_w)
    limit_b = 1.0 / math.sqrt(in_dim)
    bias = jax.random.uniform(k_b, (out_dim,), dtype,
                              minval=-limit_b, maxval=limit_b)
    return weight, bias


if __name__ == "__main__":
    key = jax.random.PRNGKey(0)
    k_x, k_p, k_x2, k_p2 = jax.random.split(key, 4)

    # --- test 1: real multi-tile grid (M split for 2 parallel tiles), f32 output,
    #             bf16 MXU operands, pre-prepared (transposed/padded) weight.
    batch, seq, in_dim, out_dim = 2, 128, 1024, 512
    x = jax.random.normal(k_x, (batch, seq, in_dim), jnp.float32)
    weight, bias = init_linear_norm_params(k_p, in_dim, out_dim,
                                           w_init_gain="linear")
    params = prepare_linear_norm_params(weight, bias,
                                        compute_dtype=jnp.bfloat16)
    y = linear_norm_apply(x, params)
    jax.block_until_ready(y)
    y_ref = x @ weight.T + bias
    assert y.shape == (batch, seq, out_dim)
    assert jnp.allclose(y, y_ref, atol=5e-2, rtol=5e-2), "f32-out path mismatch"

    # --- test 2: small / unaligned shapes, bf16 input & output (exercises the
    #             f32-accumulator + epilogue-cast kernel), forced through Pallas.
    b2, s2, in2, out2 = 2, 8, 32, 48
    xs = jax.random.normal(k_x2, (b2, s2, in2), jnp.float32).astype(jnp.bfloat16)
    w_s, bias_s = init_linear_norm_params(k_p2, in2, out2, w_init_gain="relu")
    ys = linear_norm_forward(xs, w_s, bias_s,
                             compute_dtype=jnp.bfloat16, use_pallas=True)
    jax.block_until_ready(ys)
    ys_ref = xs.astype(jnp.float32) @ w_s.T + bias_s
    assert ys.shape == (b2, s2, out2)
    assert ys.dtype == jnp.bfloat16
    assert jnp.allclose(ys.astype(jnp.float32), ys_ref,
                        atol=1e-1, rtol=1e-1), "bf16-out path mismatch"

    print("KERNEL_OK")
</pallas_src>

<mosaic_0001>
module attributes {stable_mosaic.version = 11 : i64} {
  func.func @_linear_f32out_kernel(%arg0: i32, %arg1: i32, %arg2: i32, %arg3: memref<128x1024xbf16, #tpu.memory_space<vmem>>, %arg4: memref<1024x512xbf16, #tpu.memory_space<vmem>>, %arg5: memref<1x512xf32, #tpu.memory_space<vmem>>, %arg6: memref<128x512xf32, #tpu.memory_space<vmem>>) attributes {dimension_semantics = [#tpu.dimension_semantics<parallel>, #tpu.dimension_semantics<parallel>, #tpu.dimension_semantics<arbitrary>], iteration_bounds = array<i64: 2, 1, 1>, scalar_prefetch = 0 : i64, scratch_operands = 0 : i64, tpu.core_type = #tpu.core_type<tc>, window_params = [{transform_indices = @transform_0, window_bounds = array<i64: 128, 1024>}, {transform_indices = @transform_1, window_bounds = array<i64: 1024, 512>}, {transform_indices = @transform_2, window_bounds = array<i64: 1, 512>}, {transform_indices = @transform_3, window_bounds = array<i64: 128, 512>}]} {
    %c0_i32 = arith.constant 0 : i32
    %0 = arith.cmpi eq, %arg2, %c0_i32 : i32
    %1 = arith.extui %0 : i1 to i32
    %c0_i32_0 = arith.constant 0 : i32
    %2 = arith.cmpi ne, %1, %c0_i32_0 : i32
    scf.if %2 {
      %c0_8 = arith.constant 0 : index
      %c0_9 = arith.constant 0 : index
      %9 = vector.load %arg5[%c0_8, %c0_9] : memref<1x512xf32, #tpu.memory_space<vmem>>, vector<1x512xf32>
      %10 = vector.shape_cast %9 : vector<1x512xf32> to vector<1x512xf32>
      %11 = vector.broadcast %10 : vector<1x512xf32> to vector<128x512xf32>
      %c0_10 = arith.constant 0 : index
      %c0_11 = arith.constant 0 : index
      %12 = vector.load %arg6[%c0_10, %c0_11] : memref<128x512xf32, #tpu.memory_space<vmem>>, vector<128x512xf32>
      tpu.vector_store %arg6[%c0_10, %c0_11], %11 {strides = array<i32>} : memref<128x512xf32, #tpu.memory_space<vmem>>, vector<128x512xf32>,
    } else {
    }
    %c0 = arith.constant 0 : index
    %c0_1 = arith.constant 0 : index
    %3 = vector.load %arg6[%c0, %c0_1] : memref<128x512xf32, #tpu.memory_space<vmem>>, vector<128x512xf32>
    %c0_2 = arith.constant 0 : index
    %c0_3 = arith.constant 0 : index
    %4 = vector.load %arg3[%c0_2, %c0_3] : memref<128x1024xbf16, #tpu.memory_space<vmem>>, vector<128x1024xbf16>
    %c0_4 = arith.constant 0 : index
    %c0_5 = arith.constant 0 : index
    %5 = vector.load %arg4[%c0_4, %c0_5] : memref<1024x512xbf16, #tpu.memory_space<vmem>>, vector<1024x512xbf16>
    %cst = arith.constant dense<0.000000e+00> : vector<128x512xf32>
    %6 = tpu.matmul %4, %5, %cst {dimension_numbers = #tpu.dot_dimension_numbers<[1], [0], [0], [1], [0, 0, 1, 1], [], []>} : vector<128x1024xbf16>, vector<1024x512xbf16>, vector<128x512xf32> -> vector<128x512xf32>
    %7 = arith.addf %3, %6 : vector<128x512xf32>
    %c0_6 = arith.constant 0 : index
    %c0_7 = arith.constant 0 : index
    %8 = vector.load %arg6[%c0_6, %c0_7] : memref<128x512xf32, #tpu.memory_space<vmem>>, vector<128x512xf32>
    tpu.vector_store %arg6[%c0_6, %c0_7], %7 {strides = array<i32>} : memref<128x512xf32, #tpu.memory_space<vmem>>, vector<128x512xf32>,
    return
  }
  func.func @transform_0(%arg0: i32, %arg1: i32, %arg2: i32) -> (i32, i32) {
    %c0_i32 = arith.constant 0 : i32
    return %arg0, %arg2 : i32, i32
  }
  func.func @transform_1(%arg0: i32, %arg1: i32, %arg2: i32) -> (i32, i32) {
    %c0_i32 = arith.constant 0 : i32
    return %arg2, %arg1 : i32, i32
  }
  func.func @transform_2(%arg0: i32, %arg1: i32, %arg2: i32) -> (i32, i32) {
    %c0_i32 = arith.constant 0 : i32
    %c0_i32_0 = arith.constant 0 : i32
    return %c0_i32, %arg1 : i32, i32
  }
  func.func @transform_3(%arg0: i32, %arg1: i32, %arg2: i32) -> (i32, i32) {
    %c0_i32 = arith.constant 0 : i32
    return %arg0, %arg1 : i32, i32
  }
}

</mosaic_0001>

<bundles_post_ra>
// kernel: tpu_custom_call.1
= control target key start
LH: loop header
LB: loop body
LE: loop exit
PB: predicated region body
PF: predicated region fallthrough
CT: control target
= control target key end

     0   :  { %8 = vsyncpa [#allocation3], 0  ;;  %s5572_s0 = inlined_call_operand.hbm [shape: bf16[256,1024], index: 0, kind: input, shape index: {}]   ;;  %s5573_s1 = inlined_call_operand.hbm [shape: bf16[1024,512], index: 1, kind: input, shape index: {}]   ;;  %s5574_s2 = inlined_call_operand.hbm [shape: f32[1,512], index: 2, kind: input, shape index: {}]   ;;  %s5575_s3 = inlined_call_operand.hbm [shape: f32[256,512], index: 3, kind: output, shape index: {}]  }
   0x1   :  { %10 = vsyncpa [#allocation3 + $0x1], 0 }
   0x2   :  { %11 = vsyncpa [#allocation6], 0 }
   0x3   :  { %12 = vsyncpa [#allocation4], 0 }
   0x4   :  { %14 = vsyncpa [#allocation4 + $0x1], 0  ;;  %s4523_s12 = smov 0   ;;  %s4525_s13 = smov 0  }
   0x5   :  { %s4527_s14 = smov 0   ;;  %s4529_s15 = smov 0  }
   0x6   :  { %s4531_s16 = smov 0   ;;  %s4533_s17 = smov 0  }
   0x7 LB: > { %s3509_s18 = sadd.s32 4294967295, %s4491_s17   ;;  %s3510_s19 = sadd.s32 4294967294, %s4491_s17   ;;  %s4491_s17 = sphi %s4533_s17, %s20_s17   ;;  %s4487_s16 = sphi %s4531_s16, %s5710_s16   ;;  %s4483_s15 = sphi %s4529_s15, %s5709_s15   ;;  %s4479_s14 = sphi %s4527_s14, %s5708_s14   ;;  %s4475_s13 = sphi %s4525_s13, %s5707_s13   ;;  %s4471_s12 = sphi %s4523_s12, %s5706_s12  }
   0x8   : > { %p61_p0 = scmp.ne.s32.totalorder %s4475_s13, %s4471_s12  ;;  %p4557_p1 = scmp.eq.s32.totalorder %s3509_s18, 0 }
   0x9   : > { %p4561_p2 = scmp.eq.s32.totalorder %s3509_s18, 1  ;;  %p147_p3 = scmp.eq.s32.totalorder %s3510_s19, 1 }
   0xa   : > { %s5596_s20 = scalar_select %p4557_p1, 1, 0 }
   0xb   : > { %p4567_p4 = por %p4557_p1, %p61_p0  ;;  %p3511_p5 = scmp.ge.s32.totalorder %s4491_s17, 1 }
   0xc   : > { %p4572_p6 = por %p147_p3, %p61_p0  ;;  %p154_p7 = scmp.lt.s32.totalorder %s4491_s17, 3 }
   0xd   : > { %s5598_s22 = scalar_select %p4567_p4, 1, 0 }
   0xe   : > { %s5599_s23 = scalar_select %p4572_p6, 1, 0 }
   0xf   : > { %p4577_p8 = pnand %p3511_p5, %p154_p7  ;;  %s4493_s25 = smov [#allocation5]  }
  0x10   : > { %s172_s26 = sshll.u32 %s4493_s25, 4  ;;  %s4494_s28 = smov [#allocation7]   ;;  %s173_s26 = int_to_ptr.vmem [resolvable:$true] %s172_s26 }
  0x11   : > { %p3866_p9 = pneg %p4577_p8  ;;  %s189_s29 = sshll.u32 %s4494_s28, 4  ;;  %s190_s29 = int_to_ptr.vmem [resolvable:$true] %s189_s29 }
  0x12   : > { %s4338_s30 = scalar_lea.vmem %s173_s26, 32768  ;;  %p4346_p5 = scmp.lt.s32.totalorder %s173_s26, %s173_s26 }
  0x13   : > { %p4586_p11 = pnand %p3866_p9, %p4557_p1  ;;  %p4339_p13 = scmp.ne.s32.totalorder %s173_s26, %s4338_s30 }
  0x14   : > { %p4347_p7 = scmp.lt.s32.totalorder %s4338_s30, %s4338_s30 }
  0x15   : > { %p4329_p12 = pneg %p4586_p11 }
  0x16   : > { %p4348_p10 = por %p4347_p7, %p4346_p5 }
  0x17   : > { %p4341_p0 = pnand %p4339_p13, %p4329_p12 }
  0x19   : > { %p4342_p3 = pneg %p4341_p0 }
  0x1b   : > { %p4349_p9 = pnand %p4348_p10, %p4342_p3 }
  0x1d   : > { %4352 = shalt.err (!%p4349_p9)
}
  0x1e   : > { %s4495_s4 = smov 256   ;;  %s4496_s5 = smov 16  }
  0x1f   : > { %3869 = dma.hbm_to_vmem [thread:$0]  (!%p4586_p11), %s5573_s1, 32768, %s173_s26, [#allocation6], %s4495_s4, %s4495_s4, %s4496_s5  }
  0x20   : > { %s4364_s8 = scalar_lea.vmem %s190_s29, 64  ;;  %p4372_p1 = scmp.lt.s32.totalorder %s190_s29, %s190_s29 }
  0x21   : > { %p4365_p6 = scmp.ne.s32.totalorder %s190_s29, %s4364_s8  ;;  %p4373_p4 = scmp.lt.s32.totalorder %s4364_s8, %s4364_s8 }
  0x23   : > { %p4367_p13 = pnand %p4365_p6, %p4329_p12  ;;  %p4374_p5 = por %p4373_p4, %p4372_p1 }
  0x25   : > { %p4368_p0 = pneg %p4367_p13 }
  0x27   : > { %p4375_p10 = pnand %p4374_p5, %p4368_p0 }
  0x29   : > { %4378 = shalt.err (!%p4375_p10)
}
  0x2a   : > { %3872 = dma.hbm_to_vmem [thread:$0]  (!%p4586_p11), %s5574_s2, 64, %s190_s29, [#allocation6]  }
  0x2b   : > { %s39_s11 = sadd.s32 1, %s4487_s16  ;;  %s48_s18 = sadd.s32 1, %s4479_s14 }
  0x2c   : > { %p41_p1 = scmp.ge.s32.totalorder %s39_s11, 2  ;;  %p55_p4 = scmp.ne.s32.totalorder %s4479_s14, %s4475_s13 }
  0x2d   : > { %p56_p6 = scmp.eq.s32.totalorder %s4491_s17, 0  ;;  %p3883_p12 = scmp.lt.s32.totalorder %s4491_s17, 2 }
  0x2e   : > { %s5712_s11 = smov (%p41_p1, %s39_s11), 0  ;;  %p4618_p7 = por %p4561_p2, %p55_p4 }
  0x2f   : > { %p57_p3 = por %p56_p6, %p55_p4  ;;  %s43_s25 = ssub.s32 %s4487_s16, %s5712_s11 }
  0x30   : > { %s200_s26 = sand.u32 1, %s4479_s14   ;;  %p46_p9 = scmp.eq.s32.totalorder %s43_s25, 0 }
  0x31   : > { %s3515_s27 = sshll.u32 %s200_s26, 9  ;;  %s3851_s28 = sshll.u32 %s4487_s16, 13 }
  0x32   : > { %s4627_s29 = scalar_select %p46_p9, %s4479_s14, %s48_s18  }
  0x33   : > { %s213_s5 = scalar_lea.hbm %s5572_s0, %s3851_s28  ;;  %s204_s6 = scalar_lea.vmem [#allocation2], %s3515_s27 }
  0x34   : > { %s214_s7 = sshll.u32 %s204_s6, 4  ;;  %p4634_p11 = pnand %p3883_p12, %p57_p3  ;;  %s215_s7 = int_to_ptr.vmem [resolvable:$true] %s214_s7 }
  0x35   : > { %s201_s8 = scalar_lea.sflag [#allocation3], %s200_s26  ;;  %s4392_s9 = scalar_lea.vmem %s215_s7, 8192 }
  0x36   : > { %p4381_p2 = pneg %p4634_p11  ;;  %p4393_p13 = scmp.ne.s32.totalorder %s215_s7, %s4392_s9 }
  0x37   : > { %s4497_s10 = smov [#allocation2]  }
  0x38   : > { %p4395_p0 = pnand %p4393_p13, %p4381_p2  ;;  %s4397_s18 = sshll.u32 %s4497_s10, 4  ;;  %s4398_s18 = int_to_ptr.vmem [resolvable:$false] %s4397_s18 }
  0x39   : > { %s4399_s25 = scalar_lea.vmem %s4398_s18, 16384  ;;  %p4400_p10 = scmp.lt.s32.totalorder %s215_s7, %s4398_s18 }
  0x3a   : > { %p4396_p5 = pneg %p4395_p0  ;;  %p4401_p1 = scmp.lt.s32.totalorder %s4399_s25, %s4392_s9 }
  0x3c   : > { %p4402_p4 = por %p4401_p1, %p4400_p10 }
  0x3e   : > { %p4403_p6 = pnand %p4402_p4, %p4396_p5 }
  0x40   : > { %4406 = shalt.err (!%p4403_p6)
}
  0x41   : > { %s4498_s27 = smov 512   ;;  %s4499_s28 = smov 32  }
  0x42   : > { %3876 = dma.hbm_to_vmem [thread:$0]  (!%p4634_p11), %s213_s5, 8192, %s215_s7, %s201_s8, %s4498_s27, %s4498_s27, %s4499_s28  }
  0x43   : > { %226 = sbr.rel (%p4577_p8) target bundleno = 611 (0x263), region = 32 }
  0x48   : > { %s4645_s26 = sand.u32 1, %s4475_s13   ;;  %p5604_p12 = scmp.ne.s32.totalorder %s5598_s22, 0 }
  0x49   : > { %s3520_s30 = sshll.u32 %s4645_s26, 9  ;;  %s229_s4 = scalar_lea.sflag [#allocation3], %s4645_s26 }
  0x4a   : > { %s4651_s6 = scalar_lea.vmem [#allocation2], %s3520_s30 }
  0x4b   : > { %4458 = dma.done.wait (%p5604_p12), %s229_s4, 8192  }
  0x4c   : > { %4460 = vsyncadd (%p5604_p12), %s229_s4, 4294959104  ;;  %p5605_p3 = scmp.ne.s32.totalorder %s5596_s20, 0 }
  0x4e   : > { %4462 = dma.done.wait (%p5605_p3), [#allocation6], 32832  }
  0x4f   : > { %4464 = vsyncadd (%p5605_p3), [#allocation6], 4294934464  ;;  %v3943_v0 = vld [vmem:[#allocation5 + $0xe4] ss:$16 sps:$4 sm:$0xff]   ;;  %v3947_v2 = vld [vmem:[#allocation5 + $0xe0] ss:$16 sps:$4 sm:$0xff]  }
  0x50   : > { %v3945_v1 = vld [vmem:[#allocation5 + $0x2e4] ss:$16 sps:$4 sm:$0xff]   ;;  %2344 = vmatprep.subr.bf16.mxu0 %v3943_v0  ;;  %v3948_v3 = vld [vmem:[#allocation5 + $0x2e0] ss:$16 sps:$4 sm:$0xff]   ;;  %v425_v50 = vld [vmem:[%s4651_s6 + $0x8] sm:$0xff]  ;;  %s5134_s20 = scalar_lea.vmem [#allocation8], %s3520_s30 }
  0x51   : > { %2457 = vmatprep.subr.bf16.mxu1 %v3945_v1  ;;  %v3949_v4 = vld [vmem:[#allocation5 + $0xc4] ss:$16 sps:$4 sm:$0xff]   ;;  %2345 = vmatpush1.bf16.msra.mxu0 %v3947_v2  ;;  %v3953_v6 = vld [vmem:[#allocation5 + $0xc0] ss:$16 sps:$4 sm:$0xff]   ;;  %v429_v51 = vld [vmem:[%s4651_s6 + $0x28] sm:$0xff]  ;;  %s3853_s22 = sshll.u32 %s4483_s15, 13 }
  0x52   : > { %2458 = vmatpush1.bf16.msra.mxu1 %v3948_v3  ;;  %v3951_v5 = vld [vmem:[#allocation5 + $0x2c4] ss:$16 sps:$4 sm:$0xff]   ;;  %2346 = vmatprep.subr.bf16.mxu0 %v3949_v4  ;;  %v3954_v7 = vld [vmem:[#allocation5 + $0x2c0] ss:$16 sps:$4 sm:$0xff]   ;;  %v4667_v55 = vcombine.high %v425_v50, %v429_v51  ;;  %s3393_s24 = sshll.u32 %s5134_s20, 4  ;;  %s5519_s21 = scalar_lea.hbm %s5575_s3, %s3853_s22  ;;  %s5521_s24 = int_to_ptr.vmem [resolvable:$true] %s3393_s24 }
  0x53   : > { %2459 = vmatprep.subr.bf16.mxu1 %v3951_v5  ;;  %v3955_v8 = vld [vmem:[#allocation5 + $0xa4] ss:$16 sps:$4 sm:$0xff]   ;;  %v3959_v10 = vld [vmem:[#allocation5 + $0xa0] ss:$16 sps:$4 sm:$0xff]   ;;  %s3377_s15 = scalar_lea.sflag [#allocation4], %s4645_s26  ;;  %s4407_s8 = scalar_lea.vmem %s5521_s24, 8192 }
  0x54   : > { %v3957_v9 = vld [vmem:[#allocation5 + $0x2a4] ss:$16 sps:$4 sm:$0xff]   ;;  %v3960_v11 = vld [vmem:[#allocation5 + $0x2a0] ss:$16 sps:$4 sm:$0xff]   ;;  %2489 = vmatprep.mubr.bf16.mxu1 %v4667_v55  ;;  %p4408_p8 = scmp.ne.s32.totalorder %s5521_s24, %s4407_s8  ;;  %s4500_s9 = smov [#allocation8]  }
  0x55   : > { %2347 = vmatpush1.bf16.msra.mxu0 %v3953_v6  ;;  %v3961_v12 = vld [vmem:[#allocation5 + $0x84] ss:$16 sps:$4 sm:$0xff]   ;;  %v3965_v14 = vld [vmem:[#allocation5 + $0x80] ss:$16 sps:$4 sm:$0xff]   ;;  %s4411_s10 = sshll.u32 %s4500_s9, 4  ;;  %s4412_s10 = int_to_ptr.vmem [resolvable:$false] %s4411_s10 }
  0x56   : > { %2460 = vmatpush1.bf16.msra.mxu1 %v3954_v7  ;;  %2348 = vmatprep.subr.bf16.mxu0 %v3955_v8  ;;  %v3963_v13 = vld [vmem:[#allocation5 + $0x284] ss:$16 sps:$4 sm:$0xff]   ;;  %v3966_v15 = vld [vmem:[#allocation5 + $0x280] ss:$16 sps:$4 sm:$0xff]   ;;  %p4409_p9 = pnand %p4408_p8, %p4618_p7  ;;  %s4413_s18 = scalar_lea.vmem %s4412_s10, 16384 }
  0x57   : > { %2461 = vmatprep.subr.bf16.mxu1 %v3957_v9  ;;  %v3967_v16 = vld [vmem:[#allocation5 + $0x64] ss:$16 sps:$4 sm:$0xff]   ;;  %v3971_v18 = vld [vmem:[#allocation5 + $0x60] ss:$16 sps:$4 sm:$0xff]   ;;  %p4414_p2 = scmp.lt.s32.totalorder %s5521_s24, %s4412_s10  ;;  %p4415_p13 = scmp.lt.s32.totalorder %s4413_s18, %s4407_s8 }
  0x58   : > { %v3969_v17 = vld [vmem:[#allocation5 + $0x264] ss:$16 sps:$4 sm:$0xff]   ;;  %v3972_v19 = vld [vmem:[#allocation5 + $0x260] ss:$16 sps:$4 sm:$0xff]   ;;  %p4410_p11 = pneg %p4409_p9 }
  0x59   : > { %2349 = vmatpush1.bf16.msra.mxu0 %v3959_v10  ;;  %v3973_v20 = vld [vmem:[#allocation5 + $0x44] ss:$16 sps:$4 sm:$0xff]   ;;  %v3977_v22 = vld [vmem:[#allocation5 + $0x40] ss:$16 sps:$4 sm:$0xff]   ;;  %p4416_p0 = por %p4415_p13, %p4414_p2 }
  0x5a   : > { %2462 = vmatpush1.bf16.msra.mxu1 %v3960_v11  ;;  %2350 = vmatprep.subr.bf16.mxu0 %v3961_v12  ;;  %v3975_v21 = vld [vmem:[#allocation5 + $0x244] ss:$16 sps:$4 sm:$0xff]   ;;  %v3978_v23 = vld [vmem:[#allocation5 + $0x240] ss:$16 sps:$4 sm:$0xff]   ;;  %v4674_v12 = vcombine.low %v425_v50, %v429_v51 }
  0x5b   : > { %2463 = vmatprep.subr.bf16.mxu1 %v3963_v13  ;;  %v3979_v24 = vld [vmem:[#allocation5 + $0x24] ss:$16 sps:$4 sm:$0xff]   ;;  %v3983_v26 = vld [vmem:[#allocation5 + $0x20] ss:$16 sps:$4 sm:$0xff]   ;;  %p4417_p5 = pnand %p4416_p0, %p4410_p11 }
  0x5c   : > { %v3981_v25 = vld [vmem:[#allocation5 + $0x224] ss:$16 sps:$4 sm:$0xff]   ;;  %v3984_v27 = vld [vmem:[#allocation5 + $0x220] ss:$16 sps:$4 sm:$0xff]  }
  0x5d   : > { %2351 = vmatpush1.bf16.msra.mxu0 %v3965_v14  ;;  %v3985_v28 = vld [vmem:[#allocation5 + $0x4] ss:$16 sps:$4 sm:$0xff]   ;;  %v3989_v30 = vld [vmem:[#allocation5] ss:$16 sps:$4 sm:$0xff]   ;;  %v433_v14 = vld [vmem:[%s4651_s6 + $0x48] sm:$0xff] }
  0x5e   : > { %2464 = vmatpush1.bf16.msra.mxu1 %v3966_v15  ;;  %2352 = vmatprep.subr.bf16.mxu0 %v3967_v16  ;;  %v3987_v29 = vld [vmem:[#allocation5 + $0x204] ss:$16 sps:$4 sm:$0xff]   ;;  %v3990_v31 = vld [vmem:[#allocation5 + $0x200] ss:$16 sps:$4 sm:$0xff]   ;;  %v437_v15 = vld [vmem:[%s4651_s6 + $0x68] sm:$0xff] }
  0x5f   : > { %2465 = vmatprep.subr.bf16.mxu1 %v3969_v17  ;;  %v3991_v32 = vld [vmem:[#allocation5 + $0x1e4] ss:$16 sps:$4 sm:$0xff]   ;;  %v3995_v34 = vld [vmem:[#allocation5 + $0x1e0] ss:$16 sps:$4 sm:$0xff]  }
  0x60   : > { %v3993_v33 = vld [vmem:[#allocation5 + $0x3e4] ss:$16 sps:$4 sm:$0xff]   ;;  %v3996_v35 = vld [vmem:[#allocation5 + $0x3e0] ss:$16 sps:$4 sm:$0xff]  }
  0x61   : > { %2353 = vmatpush1.bf16.msra.mxu0 %v3971_v18  ;;  %v3997_v36 = vld [vmem:[#allocation5 + $0x1c4] ss:$16 sps:$4 sm:$0xff]   ;;  %v4001_v38 = vld [vmem:[#allocation5 + $0x1c0] ss:$16 sps:$4 sm:$0xff]  }
  0x62   : > { %2466 = vmatpush1.bf16.msra.mxu1 %v3972_v19  ;;  %2354 = vmatprep.subr.bf16.mxu0 %v3973_v20  ;;  %v3999_v37 = vld [vmem:[#allocation5 + $0x3c4] ss:$16 sps:$4 sm:$0xff]   ;;  %v4002_v39 = vld [vmem:[#allocation5 + $0x3c0] ss:$16 sps:$4 sm:$0xff]   ;;  %v4681_v19 = vcombine.high %v433_v14, %v437_v15 }
  0x63   : > { %2467 = vmatprep.subr.bf16.mxu1 %v3975_v21  ;;  %v4003_v40 = vld [vmem:[#allocation5 + $0x1a4] ss:$16 sps:$4 sm:$0xff]   ;;  %v4007_v42 = vld [vmem:[#allocation5 + $0x1a0] ss:$16 sps:$4 sm:$0xff]  }
  0x64   : > { %v4005_v41 = vld [vmem:[#allocation5 + $0x3a4] ss:$16 sps:$4 sm:$0xff]   ;;  %v4008_v43 = vld [vmem:[#allocation5 + $0x3a0] ss:$16 sps:$4 sm:$0xff]  }
  0x65   : > { %2355 = vmatpush1.bf16.msra.mxu0 %v3977_v22  ;;  %v4009_v44 = vld [vmem:[#allocation5 + $0x184] ss:$16 sps:$4 sm:$0xff]   ;;  %v4013_v46 = vld [vmem:[#allocation5 + $0x180] ss:$16 sps:$4 sm:$0xff]  }
  0x66   : > { %2468 = vmatpush1.bf16.msra.mxu1 %v3978_v23  ;;  %2356 = vmatprep.subr.bf16.mxu0 %v3979_v24  ;;  %v4011_v45 = vld [vmem:[#allocation5 + $0x384] ss:$16 sps:$4 sm:$0xff]   ;;  %v4014_v47 = vld [vmem:[#allocation5 + $0x380] ss:$16 sps:$4 sm:$0xff]  }
  0x67   : > { %2469 = vmatprep.subr.bf16.mxu1 %v3981_v25  ;;  %v424_v48 = vld [vmem:[%s4651_s6] sm:$0xff] }
  0x68   : > { %v428_v49 = vld [vmem:[%s4651_s6 + $0x20] sm:$0xff] }
  0x69   : > { %2357 = vmatpush1.bf16.msra.mxu0 %v3983_v26  ;;  %v4015_v52 = vld [vmem:[#allocation5 + $0x164] ss:$16 sps:$4 sm:$0xff]   ;;  %v4665_v53 = vcombine.high %v424_v48, %v428_v49  ;;  %v4019_v56 = vld [vmem:[#allocation5 + $0x160] ss:$16 sps:$4 sm:$0xff]   ;;  %v4672_v11 = vcombine.low %v424_v48, %v428_v49 }
  0x6a   : > { %2470 = vmatpush1.bf16.msra.mxu1 %v3984_v27  ;;  %2358 = vmatprep.subr.bf16.mxu0 %v3985_v28  ;;  %v4017_v54 = vld [vmem:[#allocation5 + $0x364] ss:$16 sps:$4 sm:$0xff]   ;;  %v4020_v57 = vld [vmem:[#allocation5 + $0x360] ss:$16 sps:$4 sm:$0xff]  }
  0x6b   : > { %2471 = vmatprep.subr.bf16.mxu1 %v3987_v29  ;;  %2376 = vmatprep.mubr.bf16.mxu0 %v4665_v53  ;;  %v4021_v58 = vld [vmem:[#allocation5 + $0x144] ss:$16 sps:$4 sm:$0xff]   ;;  %v4025_v60 = vld [vmem:[#allocation5 + $0x140] ss:$16 sps:$4 sm:$0xff]   ;;  %v4691_v29 = vcombine.low %v433_v14, %v437_v15 }
  0x6c   : > { %v4023_v59 = vld [vmem:[#allocation5 + $0x344] ss:$16 sps:$4 sm:$0xff]   ;;  %v4026_v61 = vld [vmem:[#allocation5 + $0x340] ss:$16 sps:$4 sm:$0xff]  }
  0x6d   : > { %2359 = vmatpush1.bf16.msra.mxu0 %v3989_v30  ;;  %v4027_v62 = vld [vmem:[#allocation5 + $0x124] ss:$16 sps:$4 sm:$0xff]   ;;  %v4031_v0 = vld [vmem:[#allocation5 + $0x120] ss:$16 sps:$4 sm:$0xff]   ;;  %v441_v30 = vld [vmem:[%s4651_s6 + $0x88] sm:$0xff] }
  0x6e   : > { %2472 = vmatpush1.bf16.msra.mxu1 %v3990_v31  ;;  %2360 = vmatprep.subr.bf16.mxu0 %v3991_v32  ;;  %v4029_v63 = vld [vmem:[#allocation5 + $0x324] ss:$16 sps:$4 sm:$0xff]   ;;  %v4032_v1 = vld [vmem:[#allocation5 + $0x320] ss:$16 sps:$4 sm:$0xff]   ;;  %v445_v31 = vld [vmem:[%s4651_s6 + $0xa8] sm:$0xff] }
  0x6f   : > { %2473 = vmatprep.subr.bf16.mxu1 %v3993_v33  ;;  %v4033_v2 = vld [vmem:[#allocation5 + $0x104] ss:$16 sps:$4 sm:$0xff]   ;;  %v4037_v4 = vld [vmem:[#allocation5 + $0x100] ss:$16 sps:$4 sm:$0xff]  }
  0x70   : > { %v4035_v3 = vld [vmem:[#allocation5 + $0x304] ss:$16 sps:$4 sm:$0xff]   ;;  %v4038_v5 = vld [vmem:[#allocation5 + $0x300] ss:$16 sps:$4 sm:$0xff]  }
  0x71   : > { %2361 = vmatpush2.bf16.msra.mxu0 %v3995_v34  ;;  %v4041_v6 = vld [vmem:[#allocation5 + $0x4e4] ss:$16 sps:$4 sm:$0xff]   ;;  %v4039_v8 = vld [vmem:[#allocation5 + $0x4e0] ss:$16 sps:$4 sm:$0xff]  }
  0x72   : > { %2474 = vmatpush2.bf16.msra.mxu1 %v3996_v35  ;;  %2362 = vmatprep.subr.bf16.mxu0 %v3997_v36  ;;  %v4044_v7 = vld [vmem:[#allocation5 + $0x6e4] ss:$16 sps:$4 sm:$0xff]   ;;  %v4042_v9 = vld [vmem:[#allocation5 + $0x6e0] ss:$16 sps:$4 sm:$0xff]   ;;  %v4697_v35 = vcombine.high %v441_v30, %v445_v31 }
  0x73   : > { %2475 = vmatprep.subr.bf16.mxu1 %v3999_v37  ;;  %v432_v10 = vld [vmem:[%s4651_s6 + $0x40] sm:$0xff] }
  0x74   : > { %v436_v13 = vld [vmem:[%s4651_s6 + $0x60] sm:$0xff] }
  0x75   : > { %2363 = vmatpush2.bf16.msra.mxu0 %v4001_v38  ;;  %v4047_v16 = vld [vmem:[#allocation5 + $0x4c4] ss:$16 sps:$4 sm:$0xff]   ;;  %v4679_v18 = vcombine.high %v432_v10, %v436_v13  ;;  %v4045_v20 = vld [vmem:[#allocation5 + $0x4c0] ss:$16 sps:$4 sm:$0xff]   ;;  %v4689_v28 = vcombine.low %v432_v10, %v436_v13 }
  0x76   : > { %2476 = vmatpush2.bf16.msra.mxu1 %v4002_v39  ;;  %2364 = vmatprep.subr.bf16.mxu0 %v4003_v40  ;;  %v4050_v17 = vld [vmem:[#allocation5 + $0x6c4] ss:$16 sps:$4 sm:$0xff]   ;;  %v4048_v21 = vld [vmem:[#allocation5 + $0x6c0] ss:$16 sps:$4 sm:$0xff]  }
  0x77   : > { %2477 = vmatprep.subr.bf16.mxu1 %v4005_v41  ;;  %v4053_v22 = vld [vmem:[#allocation5 + $0x4a4] ss:$16 sps:$4 sm:$0xff]   ;;  %v4051_v24 = vld [vmem:[#allocation5 + $0x4a0] ss:$16 sps:$4 sm:$0xff]  }
  0x78   : > { %v4056_v23 = vld [vmem:[#allocation5 + $0x6a4] ss:$16 sps:$4 sm:$0xff]   ;;  %v4054_v25 = vld [vmem:[#allocation5 + $0x6a0] ss:$16 sps:$4 sm:$0xff]  }
  0x79   : > { %2365 = vmatpush2.bf16.msra.mxu0 %v4007_v42  ;;  %v440_v26 = vld [vmem:[%s4651_s6 + $0x80] sm:$0xff] }
  0x7a   : > { %2478 = vmatpush2.bf16.msra.mxu1 %v4008_v43  ;;  %2366 = vmatprep.subr.bf16.mxu0 %v4009_v44  ;;  %v444_v27 = vld [vmem:[%s4651_s6 + $0xa0] sm:$0xff] }
  0x7b   : > { %2479 = vmatprep.subr.bf16.mxu1 %v4011_v45  ;;  %v4059_v32 = vld [vmem:[#allocation5 + $0x484] ss:$16 sps:$4 sm:$0xff]   ;;  %v4695_v34 = vcombine.high %v440_v26, %v444_v27  ;;  %v4057_v36 = vld [vmem:[#allocation5 + $0x480] ss:$16 sps:$4 sm:$0xff]   ;;  %v4705_v44 = vcombine.low %v440_v26, %v444_v27  ;;  %v4707_v45 = vcombine.low %v441_v30, %v445_v31 }
  0x7c   : > { %v4062_v33 = vld [vmem:[#allocation5 + $0x684] ss:$16 sps:$4 sm:$0xff]   ;;  %v4060_v37 = vld [vmem:[#allocation5 + $0x680] ss:$16 sps:$4 sm:$0xff]  }
  0x7d   : > { %2367 = vmatpush2.bf16.msra.mxu0 %v4013_v46  ;;  %v4065_v38 = vld [vmem:[#allocation5 + $0x464] ss:$16 sps:$4 sm:$0xff]   ;;  %v4063_v40 = vld [vmem:[#allocation5 + $0x460] ss:$16 sps:$4 sm:$0xff]   ;;  %v449_v46 = vld [vmem:[%s4651_s6 + $0xc8] sm:$0xff] }
  0x7e   : > { %2480 = vmatpush2.bf16.msra.mxu1 %v4014_v47  ;;  %2368 = vmatprep.subr.bf16.mxu0 %v4015_v52  ;;  %v4068_v39 = vld [vmem:[#allocation5 + $0x664] ss:$16 sps:$4 sm:$0xff]   ;;  %v4066_v41 = vld [vmem:[#allocation5 + $0x660] ss:$16 sps:$4 sm:$0xff]   ;;  %v453_v47 = vld [vmem:[%s4651_s6 + $0xe8] sm:$0xff] }
  0x7f   : > { %2481 = vmatprep.subr.bf16.mxu1 %v4017_v54  ;;  %v448_v42 = vld [vmem:[%s4651_s6 + $0xc0] sm:$0xff]  ;;  %v4713_v51 = vcombine.high %v449_v46, %v453_v47 }
  0x80   : > { %v452_v43 = vld [vmem:[%s4651_s6 + $0xe0] sm:$0xff] }
  0x81   : > { %2369 = vmatpush2.bf16.msra.mxu0 %v4019_v56  ;;  %v4071_v48 = vld [vmem:[#allocation5 + $0x444] ss:$16 sps:$4 sm:$0xff]   ;;  %v4711_v50 = vcombine.high %v448_v42, %v452_v43  ;;  %v4069_v52 = vld [vmem:[#allocation5 + $0x440] ss:$16 sps:$4 sm:$0xff]  }
  0x82   : > { %2482 = vmatpush2.bf16.msra.mxu1 %v4020_v57  ;;  %2370 = vmatprep.subr.bf16.mxu0 %v4021_v58  ;;  %v4074_v49 = vld [vmem:[#allocation5 + $0x644] ss:$16 sps:$4 sm:$0xff]   ;;  %v4072_v54 = vld [vmem:[#allocation5 + $0x640] ss:$16 sps:$4 sm:$0xff]  }
  0x83   : > { %2483 = vmatprep.subr.bf16.mxu1 %v4023_v59  ;;  %v4077_v56 = vld [vmem:[#allocation5 + $0x424] ss:$16 sps:$4 sm:$0xff]   ;;  %v4075_v58 = vld [vmem:[#allocation5 + $0x420] ss:$16 sps:$4 sm:$0xff]  }
  0x84   : > { %v4080_v57 = vld [vmem:[#allocation5 + $0x624] ss:$16 sps:$4 sm:$0xff]   ;;  %v4093_v26 = vld [vmem:[#allocation5 + $0x5c0] ss:$16 sps:$4 sm:$0xff]  }
  0x85   : > { %2371 = vmatpush2.bf16.msra.mxu0 %v4025_v60  ;;  %v456_v59 = vld [vmem:[%s4651_s6 + $0x100] sm:$0xff] }
  0x86   : > { %2484 = vmatpush2.bf16.msra.mxu1 %v4026_v61  ;;  %2372 = vmatprep.subr.bf16.mxu0 %v4027_v62  ;;  %v460_v60 = vld [vmem:[%s4651_s6 + $0x120] sm:$0xff]  ;;  %v4721_v61 = vcombine.low %v448_v42, %v452_v43  ;;  %v4723_v62 = vcombine.low %v449_v46, %v453_v47 }
  0x87   : > { %2485 = vmatprep.subr.bf16.mxu1 %v4029_v63  ;;  %v457_v63 = vld [vmem:[%s4651_s6 + $0x108] sm:$0xff]  ;;  %v464_v10 = vld [vmem:[%s4651_s6 + $0x140] sm:$0xff]  ;;  %v4737_v14 = vcombine.low %v456_v59, %v460_v60 }
  0x88   : > { %v468_v13 = vld [vmem:[%s4651_s6 + $0x160] sm:$0xff] }
  0x89   : > { %2373 = vmatpush2.bf16.msra.mxu0 %v4031_v0  ;;  %v461_v0 = vld [vmem:[%s4651_s6 + $0x128] sm:$0xff]  ;;  %v4096_v27 = vld [vmem:[#allocation5 + $0x7c0] ss:$16 sps:$4 sm:$0xff]   ;;  %v4101_v30 = vld [vmem:[#allocation5 + $0x5a4] ss:$16 sps:$4 sm:$0xff]  }
  0x8a   : > { %2486 = vmatpush2.bf16.msra.mxu1 %v4032_v1  ;;  %2374 = vmatprep.subr.bf16.mxu0 %v4033_v2  ;;  %v4078_v1 = vld [vmem:[#allocation5 + $0x620] ss:$16 sps:$4 sm:$0xff]   ;;  %v4083_v2 = vld [vmem:[#allocation5 + $0x404] ss:$16 sps:$4 sm:$0xff]   ;;  %v4739_v15 = vcombine.low %v457_v63, %v461_v0 }
  0x8b   : > { %2487 = vmatprep.subr.bf16.mxu1 %v4035_v3  ;;  %v4086_v3 = vld [vmem:[#allocation5 + $0x604] ss:$16 sps:$4 sm:$0xff]  }
  0x8c   : > { %v4104_v31 = vld [vmem:[#allocation5 + $0x7a4] ss:$16 sps:$4 sm:$0xff]  }
  0x8d   : > { %2375 = vmatpush2.bf16.msra.mxu0 %v4037_v4  ;;  %v4727_v4 = vcombine.high %v456_v59, %v460_v60  ;;  %v4107_v42 = vld [vmem:[#allocation5 + $0x584] ss:$16 sps:$4 sm:$0xff]  }
  0x8e   : > { %2488 = vmatpush2.bf16.msra.mxu1 %v4038_v5  ;;  %2570 = vmatprep.subr.bf16.mxu0 %v4041_v6  ;;  %v4729_v5 = vcombine.high %v457_v63, %v461_v0  ;;  %v4081_v6 = vld [vmem:[#allocation5 + $0x400] ss:$16 sps:$4 sm:$0xff]   ;;  %v4110_v43 = vld [vmem:[#allocation5 + $0x784] ss:$16 sps:$4 sm:$0xff]   ;;  %v481_v0 = vld [vmem:[%s4651_s6 + $0x1c8] sm:$0xff] }
  0x8f   : > { %2683 = vmatprep.subr.bf16.mxu1 %v4044_v7  ;;  %v4084_v7 = vld [vmem:[#allocation5 + $0x600] ss:$16 sps:$4 sm:$0xff]  }
  0x90   : > { %2377 = vmatmul.mubr.bf16.vlgmr.msra.gmra.mxu0 %v4672_v11  ;;  %v484_v59 = vld [vmem:[%s4651_s6 + $0x1e0] sm:$0xff] }
  0x91   : > { %2490 = vmatmul.mubr.bf16.vlgmr.msra.gmra.mxu1 %v4674_v12  ;;  %2571 = vmatpush1.bf16.msra.mxu0 %v4039_v8  ;;  %v4089_v8 = vld [vmem:[#allocation5 + $0x5e4] ss:$16 sps:$4 sm:$0xff]  }
  0x92   : > { %2684 = vmatpush1.bf16.msra.mxu1 %v4042_v9  ;;  %2572 = vmatprep.subr.bf16.mxu0 %v4047_v16  ;;  %v4092_v9 = vld [vmem:[#allocation5 + $0x7e4] ss:$16 sps:$4 sm:$0xff]   ;;  %v465_v16 = vld [vmem:[%s4651_s6 + $0x148] sm:$0xff] }
  0x93   : > { %2685 = vmatprep.subr.bf16.mxu1 %v4050_v17  ;;  %2386 = vmatprep.mubr.bf16.mxu0 %v4679_v18  ;;  %v469_v17 = vld [vmem:[%s4651_s6 + $0x168] sm:$0xff] }
  0x94   : > { %2499 = vmatprep.mubr.bf16.mxu1 %v4681_v19 }
  0x95   : > { %2573 = vmatpush1.bf16.msra.mxu0 %v4045_v20  ;;  %v4087_v20 = vld [vmem:[#allocation5 + $0x5e0] ss:$16 sps:$4 sm:$0xff]  }
  0x96   : > { %2686 = vmatpush1.bf16.msra.mxu1 %v4048_v21  ;;  %2574 = vmatprep.subr.bf16.mxu0 %v4053_v22  ;;  %v4090_v21 = vld [vmem:[#allocation5 + $0x7e0] ss:$16 sps:$4 sm:$0xff]   ;;  %v4095_v22 = vld [vmem:[#allocation5 + $0x5c4] ss:$16 sps:$4 sm:$0xff]  }
  0x97   : > { %2687 = vmatprep.subr.bf16.mxu1 %v4056_v23  ;;  %v4098_v23 = vld [vmem:[#allocation5 + $0x7c4] ss:$16 sps:$4 sm:$0xff]  }
  0x98   : > { %2387 = vmatmul.mubr.bf16.gmra.mxu0 %v4689_v28 }
  0x99   : > { %2500 = vmatmul.mubr.bf16.gmra.mxu1 %v4691_v29  ;;  %2575 = vmatpush1.bf16.msra.mxu0 %v4051_v24  ;;  %v4743_v24 = vcombine.high %v464_v10, %v468_v13 }
  0x9a   : > { %2688 = vmatpush1.bf16.msra.mxu1 %v4054_v25  ;;  %2576 = vmatprep.subr.bf16.mxu0 %v4059_v32  ;;  %v4745_v25 = vcombine.high %v465_v16, %v469_v17  ;;  %v4099_v32 = vld [vmem:[#allocation5 + $0x5a0] ss:$16 sps:$4 sm:$0xff]  }
  0x9b   : > { %2689 = vmatprep.subr.bf16.mxu1 %v4062_v33  ;;  %2396 = vmatprep.mubr.bf16.mxu0 %v4695_v34  ;;  %v4102_v33 = vld [vmem:[#allocation5 + $0x7a0] ss:$16 sps:$4 sm:$0xff]  }
  0x9c   : > { %2509 = vmatprep.mubr.bf16.mxu1 %v4697_v35 }
  0x9d   : > { %2577 = vmatpush1.bf16.msra.mxu0 %v4057_v36  ;;  %v472_v36 = vld [vmem:[%s4651_s6 + $0x180] sm:$0xff] }
  0x9e   : > { %2690 = vmatpush1.bf16.msra.mxu1 %v4060_v37  ;;  %2578 = vmatprep.subr.bf16.mxu0 %v4065_v38  ;;  %v4752_v37 = vcombine.low %v464_v10, %v468_v13  ;;  %v4754_v38 = vcombine.low %v465_v16, %v469_v17  ;;  %v4125_v10 = vld [vmem:[#allocation5 + $0x524] ss:$16 sps:$4 sm:$0xff]   ;;  %v4123_v16 = vld [vmem:[#allocation5 + $0x520] ss:$16 sps:$4 sm:$0xff]  }
  0x9f   : > { %2691 = vmatprep.subr.bf16.mxu1 %v4068_v39  ;;  %v476_v39 = vld [vmem:[%s4651_s6 + $0x1a0] sm:$0xff] }
  0xa0   : > { %2397 = vmatmul.mubr.bf16.gmra.mxu0 %v4705_v44  ;;  %v4759_v46 = vcombine.high %v472_v36, %v476_v39  ;;  %v4769_v60 = vcombine.low %v472_v36, %v476_v39  ;;  %v4128_v13 = vld [vmem:[#allocation5 + $0x724] ss:$16 sps:$4 sm:$0xff]   ;;  %v4126_v17 = vld [vmem:[#allocation5 + $0x720] ss:$16 sps:$4 sm:$0xff]  }
  0xa1   : > { %2510 = vmatmul.mubr.bf16.gmra.mxu1 %v4707_v45  ;;  %2579 = vmatpush1.bf16.msra.mxu0 %v4063_v40  ;;  %v473_v40 = vld [vmem:[%s4651_s6 + $0x188] sm:$0xff]  ;;  %v4129_v36 = vld [vmem:[#allocation5 + $0x500] ss:$16 sps:$4 sm:$0xff]  }
  0xa2   : > { %2692 = vmatpush1.bf16.msra.mxu1 %v4066_v41  ;;  %2580 = vmatprep.subr.bf16.mxu0 %v4071_v48  ;;  %v477_v41 = vld [vmem:[%s4651_s6 + $0x1a8] sm:$0xff]  ;;  %v4105_v48 = vld [vmem:[#allocation5 + $0x580] ss:$16 sps:$4 sm:$0xff]  }
  0xa3   : > { %2693 = vmatprep.subr.bf16.mxu1 %v4074_v49  ;;  %2406 = vmatprep.mubr.bf16.mxu0 %v4711_v50  ;;  %v4761_v47 = vcombine.high %v473_v40, %v477_v41  ;;  %v4108_v49 = vld [vmem:[#allocation5 + $0x780] ss:$16 sps:$4 sm:$0xff]   ;;  %v4771_v63 = vcombine.low %v473_v40, %v477_v41  ;;  %v4137_v40 = vld [vmem:[#allocation5 + $0xec] ss:$16 sps:$4 sm:$0xff]  }
  0xa4   : > { %2519 = vmatprep.mubr.bf16.mxu1 %v4713_v51  ;;  %v4132_v39 = vld [vmem:[#allocation5 + $0x700] ss:$16 sps:$4 sm:$0xff]   ;;  %v4140_v41 = vld [vmem:[#allocation5 + $0x2ec] ss:$16 sps:$4 sm:$0xff]  }
  0xa5   : > { %2581 = vmatpush1.bf16.msra.mxu0 %v4069_v52  ;;  %v4113_v52 = vld [vmem:[#allocation5 + $0x564] ss:$16 sps:$4 sm:$0xff]  }
  0xa6   : > { %2694 = vmatpush1.bf16.msra.mxu1 %v4072_v54  ;;  %2582 = vmatprep.subr.bf16.mxu0 %v4077_v56  ;;  %v4116_v54 = vld [vmem:[#allocation5 + $0x764] ss:$16 sps:$4 sm:$0xff]   ;;  %v4111_v56 = vld [vmem:[#allocation5 + $0x560] ss:$16 sps:$4 sm:$0xff]  }
  0xa7   : > { %2695 = vmatprep.subr.bf16.mxu1 %v4080_v57  ;;  %v4114_v57 = vld [vmem:[#allocation5 + $0x760] ss:$16 sps:$4 sm:$0xff]  }
  0xa8   : > { %2407 = vmatmul.mubr.bf16.gmra.mxu0 %v4721_v61 }
  0xa9   : > { %2520 = vmatmul.mubr.bf16.gmra.mxu1 %v4723_v62  ;;  %2583 = vmatpush1.bf16.msra.mxu0 %v4075_v58  ;;  %v480_v58 = vld [vmem:[%s4651_s6 + $0x1c0] sm:$0xff] }
  0xaa   : > { %2696 = vmatpush1.bf16.msra.mxu1 %v4078_v1  ;;  %2584 = vmatprep.subr.bf16.mxu0 %v4083_v2  ;;  %v485_v1 = vld [vmem:[%s4651_s6 + $0x1e8] sm:$0xff]  ;;  %v4119_v2 = vld [vmem:[#allocation5 + $0x544] ss:$16 sps:$4 sm:$0xff]  }
  0xab   : > { %2697 = vmatprep.subr.bf16.mxu1 %v4086_v3  ;;  %2416 = vmatprep.mubr.bf16.mxu0 %v4727_v4  ;;  %v4122_v3 = vld [vmem:[#allocation5 + $0x744] ss:$16 sps:$4 sm:$0xff]  }
  0xac   : > { %2529 = vmatprep.mubr.bf16.mxu1 %v4729_v5 }
  0xad   : > { %2585 = vmatpush1.bf16.msra.mxu0 %v4081_v6  ;;  %v4775_v6 = vcombine.high %v480_v58, %v484_v59 }
  0xae   : > { %2698 = vmatpush1.bf16.msra.mxu1 %v4084_v7  ;;  %2586 = vmatprep.subr.bf16.mxu0 %v4089_v8  ;;  %v4777_v7 = vcombine.high %v481_v0, %v485_v1  ;;  %v4117_v8 = vld [vmem:[#allocation5 + $0x540] ss:$16 sps:$4 sm:$0xff]  }
  0xaf   : > { %2699 = vmatprep.subr.bf16.mxu1 %v4092_v9  ;;  %v4120_v9 = vld [vmem:[#allocation5 + $0x740] ss:$16 sps:$4 sm:$0xff]  }
  0xb0   : > { %2417 = vmatmul.mubr.bf16.gmra.mxu0 %v4737_v14 }
  0xb1   : > { %2530 = vmatmul.mubr.bf16.gmra.mxu1 %v4739_v15  ;;  %2587 = vmatpush2.bf16.msra.mxu0 %v4087_v20  ;;  %v426_v20 = vld [vmem:[%s4651_s6 + $0x10] sm:$0xff] }
  0xb2   : > { %2700 = vmatpush2.bf16.msra.mxu1 %v4090_v21  ;;  %2588 = vmatprep.subr.bf16.mxu0 %v4095_v22  ;;  %v430_v21 = vld [vmem:[%s4651_s6 + $0x30] sm:$0xff]  ;;  %v4785_v22 = vcombine.low %v480_v58, %v484_v59  ;;  %v4143_v58 = vld [vmem:[#allocation5 + $0xcc] ss:$16 sps:$4 sm:$0xff]  }
  0xb3   : > { %2701 = vmatprep.subr.bf16.mxu1 %v4098_v23  ;;  %2426 = vmatprep.mubr.bf16.mxu0 %v4743_v24  ;;  %v4787_v23 = vcombine.low %v481_v0, %v485_v1  ;;  %v4146_v59 = vld [vmem:[#allocation5 + $0x2cc] ss:$16 sps:$4 sm:$0xff]  }
  0xb4   : > { %2539 = vmatprep.mubr.bf16.mxu1 %v4745_v25 }
  0xb5   : > { %2589 = vmatpush2.bf16.msra.mxu0 %v4093_v26  ;;  %v427_v26 = vld [vmem:[%s4651_s6 + $0x18] sm:$0xff] }
  0xb6   : > { %2702 = vmatpush2.bf16.msra.mxu1 %v4096_v27  ;;  %2590 = vmatprep.subr.bf16.mxu0 %v4101_v30  ;;  %v431_v27 = vld [vmem:[%s4651_s6 + $0x38] sm:$0xff]  ;;  %v4131_v30 = vld [vmem:[#allocation5 + $0x504] ss:$16 sps:$4 sm:$0xff]  }
  0xb7   : > { %2703 = vmatprep.subr.bf16.mxu1 %v4104_v31  ;;  %v4134_v31 = vld [vmem:[#allocation5 + $0x704] ss:$16 sps:$4 sm:$0xff]  }
  0xb8   : > { %2427 = vmatmul.mubr.bf16.gmra.mxu0 %v4752_v37 }
  0xb9   : > { %2540 = vmatmul.mubr.bf16.gmra.mxu1 %v4754_v38  ;;  %2591 = vmatpush2.bf16.msra.mxu0 %v4099_v32  ;;  %v4791_v32 = vcombine.high %v426_v20, %v430_v21 }
  0xba   : > { %2704 = vmatpush2.bf16.msra.mxu1 %v4102_v33  ;;  %2592 = vmatprep.subr.bf16.mxu0 %v4107_v42  ;;  %v4793_v33 = vcombine.high %v427_v26, %v431_v27  ;;  %v4135_v42 = vld [vmem:[#allocation5 + $0xe8] ss:$16 sps:$4 sm:$0xff]  }
  0xbb   : > { %2705 = vmatprep.subr.bf16.mxu1 %v4110_v43  ;;  %2436 = vmatprep.mubr.bf16.mxu0 %v4759_v46  ;;  %v434_v43 = vld [vmem:[%s4651_s6 + $0x50] sm:$0xff] }
  0xbc   : > { %2549 = vmatprep.mubr.bf16.mxu1 %v4761_v47 }
  0xbd   : > { %2593 = vmatpush2.bf16.msra.mxu0 %v4105_v48  ;;  %v438_v48 = vld [vmem:[%s4651_s6 + $0x70] sm:$0xff] }
  0xbe   : > { %2706 = vmatpush2.bf16.msra.mxu1 %v4108_v49  ;;  %2594 = vmatprep.subr.bf16.mxu0 %v4113_v52  ;;  %v4801_v49 = vcombine.low %v426_v20, %v430_v21  ;;  %v4803_v52 = vcombine.low %v427_v26, %v431_v27  ;;  %v4807_v0 = vcombine.high %v434_v43, %v438_v48  ;;  %v443_v20 = vld [vmem:[%s4651_s6 + $0x98] sm:$0xff] }
  0xbf   : > { %2707 = vmatprep.subr.bf16.mxu1 %v4116_v54  ;;  %v435_v54 = vld [vmem:[%s4651_s6 + $0x58] sm:$0xff] }
  0xc0   : > { %2437 = vmatmul.mubr.bf16.gmra.mxu0 %v4769_v60  ;;  %v447_v21 = vld [vmem:[%s4651_s6 + $0xb8] sm:$0xff] }
  0xc1   : > { %2550 = vmatmul.mubr.bf16.gmra.mxu1 %v4771_v63  ;;  %2595 = vmatpush2.bf16.msra.mxu0 %v4111_v56  ;;  %v439_v56 = vld [vmem:[%s4651_s6 + $0x78] sm:$0xff] }
  0xc2   : > { %2708 = vmatpush2.bf16.msra.mxu1 %v4114_v57  ;;  %2596 = vmatprep.subr.bf16.mxu0 %v4119_v2  ;;  %v4138_v57 = vld [vmem:[#allocation5 + $0x2e8] ss:$16 sps:$4 sm:$0xff]   ;;  %v4809_v1 = vcombine.high %v435_v54, %v439_v56 }
  0xc3   : > { %2709 = vmatprep.subr.bf16.mxu1 %v4122_v3  ;;  %2446 = vmatprep.mubr.bf16.mxu0 %v4775_v6  ;;  %v4141_v2 = vld [vmem:[#allocation5 + $0xc8] ss:$16 sps:$4 sm:$0xff]  }
  0xc4   : > { %2559 = vmatprep.mubr.bf16.mxu1 %v4777_v7  ;;  %v4144_v3 = vld [vmem:[#allocation5 + $0x2c8] ss:$16 sps:$4 sm:$0xff]  }
  0xc5   : > { %2597 = vmatpush2.bf16.msra.mxu0 %v4117_v8  ;;  %v4149_v8 = vld [vmem:[#allocation5 + $0xac] ss:$16 sps:$4 sm:$0xff]   ;;  %v4147_v26 = vld [vmem:[#allocation5 + $0xa8] ss:$16 sps:$4 sm:$0xff]  }
  0xc6   : > { %2710 = vmatpush2.bf16.msra.mxu1 %v4120_v9  ;;  %2598 = vmatprep.subr.bf16.mxu0 %v4125_v10  ;;  %v4152_v9 = vld [vmem:[#allocation5 + $0x2ac] ss:$16 sps:$4 sm:$0xff]   ;;  %v442_v10 = vld [vmem:[%s4651_s6 + $0x90] sm:$0xff]  ;;  %v4150_v27 = vld [vmem:[#allocation5 + $0x2a8] ss:$16 sps:$4 sm:$0xff]  }
  0xc7   : > { %2711 = vmatprep.subr.bf16.mxu1 %v4128_v13  ;;  %v446_v13 = vld [vmem:[%s4651_s6 + $0xb0] sm:$0xff] }
  0xc8   : > { %2447 = vmatmul.mubr.bf16.gmra.mxu0 %v4785_v22 }
  0xc9   : > { %2560 = vmatmul.mubr.bf16.gmra.mxu1 %v4787_v23  ;;  %2599 = vmatpush2.bf16.msra.mxu0 %v4123_v16  ;;  %v4817_v16 = vcombine.low %v434_v43, %v438_v48  ;;  %v4164_v43 = vld [vmem:[#allocation5 + $0x26c] ss:$16 sps:$4 sm:$0xff]   ;;  %v4159_v48 = vld [vmem:[#allocation5 + $0x68] ss:$16 sps:$4 sm:$0xff]  }
  0xca   : > { %2712 = vmatpush2.bf16.msra.mxu1 %v4126_v17  ;;  %2600 = vmatprep.subr.bf16.mxu0 %v4131_v30  ;;  %v4819_v17 = vcombine.low %v435_v54, %v439_v56  ;;  %v4155_v30 = vld [vmem:[#allocation5 + $0x8c] ss:$16 sps:$4 sm:$0xff]   ;;  %v4162_v54 = vld [vmem:[#allocation5 + $0x268] ss:$16 sps:$4 sm:$0xff]   ;;  %v450_v56 = vld [vmem:[%s4651_s6 + $0xd0] sm:$0xff] }
  0xcb   : > { %2713 = vmatprep.subr.bf16.mxu1 %v4134_v31  ;;  %2602 = vmatprep.mubr.bf16.mxu0 %v4791_v32  ;;  %v4158_v31 = vld [vmem:[#allocation5 + $0x28c] ss:$16 sps:$4 sm:$0xff]  }
  0xcc   : > { %2715 = vmatprep.mubr.bf16.mxu1 %v4793_v33 }
  0xcd   : > { %2601 = vmatpush2.bf16.msra.mxu0 %v4129_v36  ;;  %v4823_v36 = vcombine.high %v442_v10, %v446_v13 }
  0xce   : > { %2714 = vmatpush2.bf16.msra.mxu1 %v4132_v39  ;;  %2796 = vmatprep.subr.bf16.mxu0 %v4137_v40  ;;  %v4825_v39 = vcombine.high %v443_v20, %v447_v21  ;;  %v4153_v40 = vld [vmem:[#allocation5 + $0x88] ss:$16 sps:$4 sm:$0xff]  }
  0xcf   : > { %2909 = vmatprep.subr.bf16.mxu1 %v4140_v41  ;;  %v4156_v41 = vld [vmem:[#allocation5 + $0x288] ss:$16 sps:$4 sm:$0xff]  }
  0xd0   : > { %2603 = vmatmul.mubr.bf16.vlgmr.msra.gmra.mxu0 %v4801_v49 }
  0xd1   : > { %2716 = vmatmul.mubr.bf16.vlgmr.msra.gmra.mxu1 %v4803_v52  ;;  %2797 = vmatpush1.bf16.msra.mxu0 %v4135_v42  ;;  %v4161_v42 = vld [vmem:[#allocation5 + $0x6c] ss:$16 sps:$4 sm:$0xff]  }
  0xd2   : > { %2910 = vmatpush1.bf16.msra.mxu1 %v4138_v57  ;;  %2798 = vmatprep.subr.bf16.mxu0 %v4143_v58  ;;  %v4832_v57 = vcombine.low %v442_v10, %v446_v13  ;;  %v4834_v58 = vcombine.low %v443_v20, %v447_v21  ;;  %v4165_v10 = vld [vmem:[#allocation5 + $0x48] ss:$16 sps:$4 sm:$0xff]   ;;  %v4173_v20 = vld [vmem:[#allocation5 + $0x2c] ss:$16 sps:$4 sm:$0xff]  }
  0xd3   : > { %2911 = vmatprep.subr.bf16.mxu1 %v4146_v59  ;;  %2612 = vmatprep.mubr.bf16.mxu0 %v4807_v0  ;;  %v454_v59 = vld [vmem:[%s4651_s6 + $0xf0] sm:$0xff]  ;;  %v4168_v13 = vld [vmem:[#allocation5 + $0x248] ss:$16 sps:$4 sm:$0xff]   ;;  %v4176_v21 = vld [vmem:[#allocation5 + $0x22c] ss:$16 sps:$4 sm:$0xff]  }
  0xd4   : > { %2725 = vmatprep.mubr.bf16.mxu1 %v4809_v1  ;;  %5606 = vst [vmem:[#allocation12_spill] sm:$0xff] %v4832_v57  ;;  %5607 = vst [vmem:[#allocation13_spill] sm:$0xff] %v4834_v58 }
  0xd5   : > { %2799 = vmatpush1.bf16.msra.mxu0 %v4141_v2  ;;  %v451_v2 = vld [vmem:[%s4651_s6 + $0xd8] sm:$0xff] }
  0xd6   : > { %2912 = vmatpush1.bf16.msra.mxu1 %v4144_v3  ;;  %2800 = vmatprep.subr.bf16.mxu0 %v4149_v8  ;;  %v455_v3 = vld [vmem:[%s4651_s6 + $0xf8] sm:$0xff] }
  0xd7   : > { %2913 = vmatprep.subr.bf16.mxu1 %v4152_v9  ;;  %v4167_v8 = vld [vmem:[#allocation5 + $0x4c] ss:$16 sps:$4 sm:$0xff]  }
  0xd8   : > { %2613 = vmatmul.mubr.bf16.gmra.mxu0 %v4817_v16  ;;  %v4170_v9 = vld [vmem:[#allocation5 + $0x24c] ss:$16 sps:$4 sm:$0xff]  }
  0xd9   : > { %2726 = vmatmul.mubr.bf16.gmra.mxu1 %v4819_v17  ;;  %2801 = vmatpush1.bf16.msra.mxu0 %v4147_v26  ;;  %v4839_v26 = vcombine.high %v450_v56, %v454_v59 }
  0xda   : > { %2914 = vmatpush1.bf16.msra.mxu1 %v4150_v27  ;;  %2802 = vmatprep.subr.bf16.mxu0 %v4155_v30  ;;  %v4841_v27 = vcombine.high %v451_v2, %v455_v3  ;;  %v4171_v30 = vld [vmem:[#allocation5 + $0x28] ss:$16 sps:$4 sm:$0xff]  }
  0xdb   : > { %2915 = vmatprep.subr.bf16.mxu1 %v4158_v31  ;;  %2622 = vmatprep.mubr.bf16.mxu0 %v4823_v36  ;;  %5608 = vst [vmem:[#allocation14_spill] sm:$0xff] %v4839_v26  ;;  %v4174_v31 = vld [vmem:[#allocation5 + $0x228] ss:$16 sps:$4 sm:$0xff]  }
  0xdc   : > { %2735 = vmatprep.mubr.bf16.mxu1 %v4825_v39  ;;  %5609 = vst [vmem:[#allocation15_spill] sm:$0xff] %v4841_v27 }
  0xdd   : > { %2803 = vmatpush1.bf16.msra.mxu0 %v4153_v40  ;;  %v458_v40 = vld [vmem:[%s4651_s6 + $0x110] sm:$0xff] }
  0xde   : > { %2916 = vmatpush1.bf16.msra.mxu1 %v4156_v41  ;;  %2804 = vmatprep.subr.bf16.mxu0 %v4161_v42  ;;  %v462_v41 = vld [vmem:[%s4651_s6 + $0x130] sm:$0xff]  ;;  %v4849_v42 = vcombine.low %v450_v56, %v454_v59  ;;  %v4177_v56 = vld [vmem:[#allocation5 + $0x8] ss:$16 sps:$4 sm:$0xff]  }
  0xdf   : > { %2917 = vmatprep.subr.bf16.mxu1 %v4164_v43  ;;  %v4851_v43 = vcombine.low %v451_v2, %v455_v3  ;;  %v4180_v59 = vld [vmem:[#allocation5 + $0x208] ss:$16 sps:$4 sm:$0xff]   ;;  %v4185_v2 = vld [vmem:[#allocation5 + $0x1ec] ss:$16 sps:$4 sm:$0xff]  }
  0xe0   : > { %2623 = vmatmul.mubr.bf16.gmra.mxu0 %v4832_v57  ;;  %5610 = vst [vmem:[#allocation16_spill] sm:$0xff] %v4849_v42  ;;  %v463_v57 = vld [vmem:[%s4651_s6 + $0x138] sm:$0xff] }
  0xe1   : > { %2736 = vmatmul.mubr.bf16.gmra.mxu1 %v4834_v58  ;;  %2805 = vmatpush1.bf16.msra.mxu0 %v4159_v48  ;;  %5611 = vst [vmem:[#allocation17_spill] sm:$0xff] %v4851_v43  ;;  %v459_v58 = vld [vmem:[%s4651_s6 + $0x118] sm:$0xff] }
  0xe2   : > { %2918 = vmatpush1.bf16.msra.mxu1 %v4162_v54  ;;  %2806 = vmatprep.subr.bf16.mxu0 %v4167_v8  ;;  %v4179_v48 = vld [vmem:[#allocation5 + $0xc] ss:$16 sps:$4 sm:$0xff]   ;;  %v4855_v8 = vcombine.high %v458_v40, %v462_v41 }
  0xe3   : > { %2919 = vmatprep.subr.bf16.mxu1 %v4170_v9  ;;  %2632 = vmatprep.mubr.bf16.mxu0 %v4839_v26  ;;  %v4182_v54 = vld [vmem:[#allocation5 + $0x20c] ss:$16 sps:$4 sm:$0xff]   ;;  %v4857_v9 = vcombine.high %v459_v58, %v463_v57 }
  0xe4   : > { %2745 = vmatprep.mubr.bf16.mxu1 %v4841_v27  ;;  %5612 = vst [vmem:[#allocation18_spill] sm:$0xff] %v4855_v8  ;;  %v4188_v3 = vld [vmem:[#allocation5 + $0x3ec] ss:$16 sps:$4 sm:$0xff]  }
  0xe5   : > { %2807 = vmatpush1.bf16.msra.mxu0 %v4165_v10  ;;  %5613 = vst [vmem:[#allocation19_spill] sm:$0xff] %v4857_v9  ;;  %v4183_v10 = vld [vmem:[#allocation5 + $0x1e8] ss:$16 sps:$4 sm:$0xff]  }
  0xe6   : > { %2920 = vmatpush1.bf16.msra.mxu1 %v4168_v13  ;;  %2808 = vmatprep.subr.bf16.mxu0 %v4173_v20  ;;  %v4186_v13 = vld [vmem:[#allocation5 + $0x3e8] ss:$16 sps:$4 sm:$0xff]   ;;  %v466_v20 = vld [vmem:[%s4651_s6 + $0x150] sm:$0xff] }
  0xe7   : > { %2921 = vmatprep.subr.bf16.mxu1 %v4176_v21  ;;  %v470_v21 = vld [vmem:[%s4651_s6 + $0x170] sm:$0xff]  ;;  %v467_v27 = vld [vmem:[%s4651_s6 + $0x158] sm:$0xff] }
  0xe8   : > { %2633 = vmatmul.mubr.bf16.gmra.mxu0 %v4849_v42  ;;  %v4865_v42 = vcombine.low %v458_v40, %v462_v41  ;;  %v471_v26 = vld [vmem:[%s4651_s6 + $0x178] sm:$0xff] }
  0xe9   : > { %2746 = vmatmul.mubr.bf16.gmra.mxu1 %v4851_v43  ;;  %2809 = vmatpush1.bf16.msra.mxu0 %v4171_v30  ;;  %v4867_v43 = vcombine.low %v459_v58, %v463_v57  ;;  %v4191_v30 = vld [vmem:[#allocation5 + $0x1cc] ss:$16 sps:$4 sm:$0xff]   ;;  %v4189_v57 = vld [vmem:[#allocation5 + $0x1c8] ss:$16 sps:$4 sm:$0xff]  }
  0xea   : > { %2922 = vmatpush1.bf16.msra.mxu1 %v4174_v31  ;;  %2810 = vmatprep.subr.bf16.mxu0 %v4179_v48  ;;  %5614 = vst [vmem:[#allocation20_spill] sm:$0xff] %v4865_v42  ;;  %v4194_v31 = vld [vmem:[#allocation5 + $0x3cc] ss:$16 sps:$4 sm:$0xff]   ;;  %v4871_v48 = vcombine.high %v466_v20, %v470_v21  ;;  %v4192_v58 = vld [vmem:[#allocation5 + $0x3c8] ss:$16 sps:$4 sm:$0xff]  }
  0xeb   : > { %2923 = vmatprep.subr.bf16.mxu1 %v4182_v54  ;;  %2642 = vmatprep.mubr.bf16.mxu0 %v4855_v8  ;;  %5615 = vst [vmem:[#allocation21_spill] sm:$0xff] %v4867_v43  ;;  %v4873_v54 = vcombine.high %v467_v27, %v471_v26  ;;  %v4197_v40 = vld [vmem:[#allocation5 + $0x1ac] ss:$16 sps:$4 sm:$0xff]  }
  0xec   : > { %2755 = vmatprep.mubr.bf16.mxu1 %v4857_v9  ;;  %5616 = vst [vmem:[#allocation22_spill] sm:$0xff] %v4871_v48  ;;  %v4200_v41 = vld [vmem:[#allocation5 + $0x3ac] ss:$16 sps:$4 sm:$0xff]  }
  0xed   : > { %2811 = vmatpush1.bf16.msra.mxu0 %v4177_v56  ;;  %5617 = vst [vmem:[#allocation23_spill] sm:$0xff] %v4873_v54  ;;  %v4195_v56 = vld [vmem:[#allocation5 + $0x1a8] ss:$16 sps:$4 sm:$0xff]  }
  0xee   : > { %2924 = vmatpush1.bf16.msra.mxu1 %v4180_v59  ;;  %2812 = vmatprep.subr.bf16.mxu0 %v4185_v2  ;;  %v4198_v59 = vld [vmem:[#allocation5 + $0x3a8] ss:$16 sps:$4 sm:$0xff]   ;;  %v474_v2 = vld [vmem:[%s4651_s6 + $0x190] sm:$0xff] }
  0xef   : > { %2925 = vmatprep.subr.bf16.mxu1 %v4188_v3  ;;  %v478_v3 = vld [vmem:[%s4651_s6 + $0x1b0] sm:$0xff]  ;;  %v475_v9 = vld [vmem:[%s4651_s6 + $0x198] sm:$0xff] }
  0xf0   : > { %2643 = vmatmul.mubr.bf16.gmra.mxu0 %v4865_v42  ;;  %v4881_v42 = vcombine.low %v466_v20, %v470_v21  ;;  %v479_v8 = vld [vmem:[%s4651_s6 + $0x1b8] sm:$0xff] }
  0xf1   : > { %2756 = vmatmul.mubr.bf16.gmra.mxu1 %v4867_v43  ;;  %2813 = vmatpush2.bf16.msra.mxu0 %v4183_v10  ;;  %v4883_v43 = vcombine.low %v467_v27, %v471_v26  ;;  %v4203_v10 = vld [vmem:[#allocation5 + $0x18c] ss:$16 sps:$4 sm:$0xff]   ;;  %v4201_v26 = vld [vmem:[#allocation5 + $0x188] ss:$16 sps:$4 sm:$0xff]  }
  0xf2   : > { %2926 = vmatpush2.bf16.msra.mxu1 %v4186_v13  ;;  %2814 = vmatprep.subr.bf16.mxu0 %v4191_v30  ;;  %5618 = vst [vmem:[#allocation24_spill] sm:$0xff] %v4881_v42  ;;  %v4206_v13 = vld [vmem:[#allocation5 + $0x38c] ss:$16 sps:$4 sm:$0xff]   ;;  %v4887_v30 = vcombine.high %v474_v2, %v478_v3  ;;  %v4204_v27 = vld [vmem:[#allocation5 + $0x388] ss:$16 sps:$4 sm:$0xff]  }
  0xf3   : > { %2927 = vmatprep.subr.bf16.mxu1 %v4194_v31  ;;  %2652 = vmatprep.mubr.bf16.mxu0 %v4871_v48  ;;  %5619 = vst [vmem:[#allocation25_spill] sm:$0xff] %v4883_v43  ;;  %v4889_v31 = vcombine.high %v475_v9, %v479_v8  ;;  %v4209_v20 = vld [vmem:[#allocation5 + $0x16c] ss:$16 sps:$4 sm:$0xff]  }
  0xf4   : > { %2765 = vmatprep.mubr.bf16.mxu1 %v4873_v54  ;;  %v4212_v21 = vld [vmem:[#allocation5 + $0x36c] ss:$16 sps:$4 sm:$0xff]  }
  0xf5   : > { %2815 = vmatpush2.bf16.msra.mxu0 %v4189_v57  ;;  %v4207_v57 = vld [vmem:[#allocation5 + $0x168] ss:$16 sps:$4 sm:$0xff]  }
  0xf6   : > { %2928 = vmatpush2.bf16.msra.mxu1 %v4192_v58  ;;  %2816 = vmatprep.subr.bf16.mxu0 %v4197_v40  ;;  %v4210_v58 = vld [vmem:[#allocation5 + $0x368] ss:$16 sps:$4 sm:$0xff]   ;;  %v482_v40 = vld [vmem:[%s4651_s6 + $0x1d0] sm:$0xff] }
  0xf7   : > { %2929 = vmatprep.subr.bf16.mxu1 %v4200_v41  ;;  %v486_v41 = vld [vmem:[%s4651_s6 + $0x1f0] sm:$0xff]  ;;  %v483_v54 = vld [vmem:[%s4651_s6 + $0x1d8] sm:$0xff] }
  0xf8   : > { %2653 = vmatmul.mubr.bf16.gmra.mxu0 %v4881_v42  ;;  %v4897_v42 = vcombine.low %v474_v2, %v478_v3  ;;  %v487_v48 = vld [vmem:[%s4651_s6 + $0x1f8] sm:$0xff] }
  0xf9   : > { %2766 = vmatmul.mubr.bf16.gmra.mxu1 %v4883_v43  ;;  %2817 = vmatpush2.bf16.msra.mxu0 %v4195_v56  ;;  %v4899_v43 = vcombine.low %v475_v9, %v479_v8  ;;  %v4215_v56 = vld [vmem:[#allocation5 + $0x14c] ss:$16 sps:$4 sm:$0xff]   ;;  %v4213_v2 = vld [vmem:[#allocation5 + $0x148] ss:$16 sps:$4 sm:$0xff]  }
  0xfa   : > { %2930 = vmatpush2.bf16.msra.mxu1 %v4198_v59  ;;  %2818 = vmatprep.subr.bf16.mxu0 %v4203_v10  ;;  %v4218_v59 = vld [vmem:[#allocation5 + $0x34c] ss:$16 sps:$4 sm:$0xff]   ;;  %v4903_v10 = vcombine.high %v482_v40, %v486_v41  ;;  %v4216_v3 = vld [vmem:[#allocation5 + $0x348] ss:$16 sps:$4 sm:$0xff]  }
  0xfb   : > { %2931 = vmatprep.subr.bf16.mxu1 %v4206_v13  ;;  %2662 = vmatprep.mubr.bf16.mxu0 %v4887_v30  ;;  %5620 = vst [vmem:[#allocation26_spill] sm:$0xff] %v4899_v43  ;;  %v4905_v13 = vcombine.high %v483_v54, %v487_v48  ;;  %v4221_v8 = vld [vmem:[#allocation5 + $0x12c] ss:$16 sps:$4 sm:$0xff]  }
  0xfc   : > { %2775 = vmatprep.mubr.bf16.mxu1 %v4889_v31  ;;  %v4224_v9 = vld [vmem:[#allocation5 + $0x32c] ss:$16 sps:$4 sm:$0xff]  }
  0xfd   : > { %2819 = vmatpush2.bf16.msra.mxu0 %v4201_v26  ;;  %v4911_v26 = vcombine.low %v482_v40, %v486_v41  ;;  %v4233_v40 = vld [vmem:[#allocation5 + $0x4ec] ss:$16 sps:$4 sm:$0xff]   ;;  %v4234_v41 = vld [vmem:[#allocation5 + $0x6e8] ss:$16 sps:$4 sm:$0xff]  }
  0xfe   : > { %2932 = vmatpush2.bf16.msra.mxu1 %v4204_v27  ;;  %2820 = vmatprep.subr.bf16.mxu0 %v4209_v20  ;;  %v4913_v27 = vcombine.low %v483_v54, %v487_v48  ;;  %v4219_v20 = vld [vmem:[#allocation5 + $0x128] ss:$16 sps:$4 sm:$0xff]   ;;  %v4236_v48 = vld [vmem:[#allocation5 + $0x6ec] ss:$16 sps:$4 sm:$0xff]  }
  0xff   : > { %2933 = vmatprep.subr.bf16.mxu1 %v4212_v21  ;;  %v4222_v21 = vld [vmem:[#allocation5 + $0x328] ss:$16 sps:$4 sm:$0xff]  }
 0x100   : > { %2663 = vmatmul.mubr.bf16.gmra.mxu0 %v4897_v42  ;;  %v4231_v54 = vld [vmem:[#allocation5 + $0x4e8] ss:$16 sps:$4 sm:$0xff]  }
 0x101   : > { %2776 = vmatmul.mubr.bf16.gmra.mxu1 %v4899_v43  ;;  %2821 = vmatpush2.bf16.msra.mxu0 %v4207_v57  ;;  %v4227_v43 = vld [vmem:[#allocation5 + $0x10c] ss:$16 sps:$4 sm:$0xff]  }
 0x102   : > { %2934 = vmatpush2.bf16.msra.mxu1 %v4210_v58  ;;  %2822 = vmatprep.subr.bf16.mxu0 %v4215_v56  ;;  %v4230_v57 = vld [vmem:[#allocation5 + $0x30c] ss:$16 sps:$4 sm:$0xff]   ;;  %v4225_v58 = vld [vmem:[#allocation5 + $0x108] ss:$16 sps:$4 sm:$0xff]  }
 0x103   : > { %2935 = vmatprep.subr.bf16.mxu1 %v4218_v59  ;;  %2672 = vmatprep.mubr.bf16.mxu0 %v4903_v10  ;;  %v4228_v56 = vld [vmem:[#allocation5 + $0x308] ss:$16 sps:$4 sm:$0xff]   ;;  %v4239_v59 = vld [vmem:[#allocation5 + $0x4cc] ss:$16 sps:$4 sm:$0xff]  }
 0x104   : > { %2785 = vmatprep.mubr.bf16.mxu1 %v4905_v13 }
 0x105   : > { %2823 = vmatpush2.bf16.msra.mxu0 %v4213_v2  ;;  %v4242_v2 = vld [vmem:[#allocation5 + $0x6cc] ss:$16 sps:$4 sm:$0xff]  }
 0x106   : > { %2936 = vmatpush2.bf16.msra.mxu1 %v4216_v3  ;;  %2824 = vmatprep.subr.bf16.mxu0 %v4221_v8  ;;  %v4240_v3 = vld [vmem:[#allocation5 + $0x6c8] ss:$16 sps:$4 sm:$0xff]  }
 0x107   : > { %2937 = vmatprep.subr.bf16.mxu1 %v4224_v9  ;;  %v4243_v8 = vld [vmem:[#allocation5 + $0x4a8] ss:$16 sps:$4 sm:$0xff]  }
 0x108   : > { %2673 = vmatmul.mubr.bf16.gmra.mxu0 %v4911_v26  ;;  %v4246_v9 = vld [vmem:[#allocation5 + $0x6a8] ss:$16 sps:$4 sm:$0xff]  }
 0x109   : > { %2786 = vmatmul.mubr.bf16.gmra.mxu1 %v4913_v27  ;;  %2825 = vmatpush2.bf16.msra.mxu0 %v4219_v20  ;;  %v4249_v20 = vld [vmem:[#allocation5 + $0x488] ss:$16 sps:$4 sm:$0xff]  }
 0x10a   : > { %2938 = vmatpush2.bf16.msra.mxu1 %v4222_v21  ;;  %2826 = vmatprep.subr.bf16.mxu0 %v4227_v43  ;;  %v4237_v43 = vld [vmem:[#allocation5 + $0x4c8] ss:$16 sps:$4 sm:$0xff]  }
 0x10b   : > { %2939 = vmatprep.subr.bf16.mxu1 %v4230_v57  ;;  %2828 = vmatprep.mubr.bf16.mxu0 %v4665_v53  ;;  %v4245_v53 = vld [vmem:[#allocation5 + $0x4ac] ss:$16 sps:$4 sm:$0xff]   ;;  %v4252_v21 = vld [vmem:[#allocation5 + $0x688] ss:$16 sps:$4 sm:$0xff]  }
 0x10c   : > { %2941 = vmatprep.mubr.bf16.mxu1 %v4667_v55  ;;  %v4248_v55 = vld [vmem:[#allocation5 + $0x6ac] ss:$16 sps:$4 sm:$0xff]   ;;  %v4255_v57 = vld [vmem:[#allocation5 + $0x468] ss:$16 sps:$4 sm:$0xff]  }
 0x10d   : > { %2827 = vmatpush2.bf16.msra.mxu0 %v4225_v58  ;;  %v4258_v58 = vld [vmem:[#allocation5 + $0x668] ss:$16 sps:$4 sm:$0xff]  }
 0x10e   : > { %2940 = vmatpush2.bf16.msra.mxu1 %v4228_v56  ;;  %3022 = vmatprep.subr.bf16.mxu0 %v4233_v40  ;;  %v4261_v56 = vld [vmem:[#allocation5 + $0x448] ss:$16 sps:$4 sm:$0xff]  }
 0x10f   : > { %3135 = vmatprep.subr.bf16.mxu1 %v4236_v48  ;;  %v4264_v40 = vld [vmem:[#allocation5 + $0x648] ss:$16 sps:$4 sm:$0xff]  }
 0x110   : > { %2829 = vmatmul.mubr.bf16.vlgmr.msra.gmra.mxu0 %v4672_v11  ;;  %v4251_v11 = vld [vmem:[#allocation5 + $0x48c] ss:$16 sps:$4 sm:$0xff]   ;;  %v4267_v48 = vld [vmem:[#allocation5 + $0x428] ss:$16 sps:$4 sm:$0xff]  }
 0x111   : > { %2942 = vmatmul.mubr.bf16.vlgmr.msra.gmra.mxu1 %v4674_v12  ;;  %3023 = vmatpush1.bf16.msra.mxu0 %v4231_v54  ;;  %v4254_v12 = vld [vmem:[#allocation5 + $0x68c] ss:$16 sps:$4 sm:$0xff]   ;;  %v4270_v54 = vld [vmem:[#allocation5 + $0x628] ss:$16 sps:$4 sm:$0xff]  }
 0x112   : > { %3136 = vmatpush1.bf16.msra.mxu1 %v4234_v41  ;;  %3024 = vmatprep.subr.bf16.mxu0 %v4239_v59  ;;  %v4273_v41 = vld [vmem:[#allocation5 + $0x408] ss:$16 sps:$4 sm:$0xff]  }
 0x113   : > { %3137 = vmatprep.subr.bf16.mxu1 %v4242_v2  ;;  %2838 = vmatprep.mubr.bf16.mxu0 %v4679_v18  ;;  %v4257_v18 = vld [vmem:[#allocation5 + $0x46c] ss:$16 sps:$4 sm:$0xff]   ;;  %v4276_v59 = vld [vmem:[#allocation5 + $0x608] ss:$16 sps:$4 sm:$0xff]  }
 0x114   : > { %2951 = vmatprep.mubr.bf16.mxu1 %v4681_v19  ;;  %v4260_v19 = vld [vmem:[#allocation5 + $0x66c] ss:$16 sps:$4 sm:$0xff]   ;;  %v4279_v2 = vld [vmem:[#allocation5 + $0x5e8] ss:$16 sps:$4 sm:$0xff]  }
 0x115   : > { %3025 = vmatpush1.bf16.msra.mxu0 %v4237_v43  ;;  %v4282_v43 = vld [vmem:[#allocation5 + $0x7e8] ss:$16 sps:$4 sm:$0xff]  }
 0x116   : > { %3138 = vmatpush1.bf16.msra.mxu1 %v4240_v3  ;;  %3026 = vmatprep.subr.bf16.mxu0 %v4245_v53  ;;  %v4285_v3 = vld [vmem:[#allocation5 + $0x5c8] ss:$16 sps:$4 sm:$0xff]  }
 0x117   : > { %3139 = vmatprep.subr.bf16.mxu1 %v4248_v55  ;;  %v4288_v53 = vld [vmem:[#allocation5 + $0x7c8] ss:$16 sps:$4 sm:$0xff]  }
 0x118   : > { %2839 = vmatmul.mubr.bf16.gmra.mxu0 %v4689_v28  ;;  %v4263_v28 = vld [vmem:[#allocation5 + $0x44c] ss:$16 sps:$4 sm:$0xff]   ;;  %v4291_v55 = vld [vmem:[#allocation5 + $0x5a8] ss:$16 sps:$4 sm:$0xff]  }
 0x119   : > { %2952 = vmatmul.mubr.bf16.gmra.mxu1 %v4691_v29  ;;  %3027 = vmatpush1.bf16.msra.mxu0 %v4243_v8  ;;  %v4266_v29 = vld [vmem:[#allocation5 + $0x64c] ss:$16 sps:$4 sm:$0xff]   ;;  %v4294_v8 = vld [vmem:[#allocation5 + $0x7a8] ss:$16 sps:$4 sm:$0xff]  }
 0x11a   : > { %3140 = vmatpush1.bf16.msra.mxu1 %v4246_v9  ;;  %3028 = vmatprep.subr.bf16.mxu0 %v4251_v11  ;;  %v4297_v9 = vld [vmem:[#allocation5 + $0x588] ss:$16 sps:$4 sm:$0xff]  }
 0x11b   : > { %3141 = vmatprep.subr.bf16.mxu1 %v4254_v12  ;;  %2848 = vmatprep.mubr.bf16.mxu0 %v4695_v34  ;;  %v4269_v34 = vld [vmem:[#allocation5 + $0x42c] ss:$16 sps:$4 sm:$0xff]   ;;  %v4300_v11 = vld [vmem:[#allocation5 + $0x788] ss:$16 sps:$4 sm:$0xff]  }
 0x11c   : > { %2961 = vmatprep.mubr.bf16.mxu1 %v4697_v35  ;;  %v4272_v35 = vld [vmem:[#allocation5 + $0x62c] ss:$16 sps:$4 sm:$0xff]   ;;  %v4303_v12 = vld [vmem:[#allocation5 + $0x568] ss:$16 sps:$4 sm:$0xff]  }
 0x11d   : > { %3029 = vmatpush1.bf16.msra.mxu0 %v4249_v20  ;;  %v4306_v20 = vld [vmem:[#allocation5 + $0x768] ss:$16 sps:$4 sm:$0xff]  }
 0x11e   : > { %3142 = vmatpush1.bf16.msra.mxu1 %v4252_v21  ;;  %3030 = vmatprep.subr.bf16.mxu0 %v4257_v18  ;;  %v4309_v21 = vld [vmem:[#allocation5 + $0x548] ss:$16 sps:$4 sm:$0xff]  }
 0x11f   : > { %3143 = vmatprep.subr.bf16.mxu1 %v4260_v19  ;;  %v4312_v18 = vld [vmem:[#allocation5 + $0x748] ss:$16 sps:$4 sm:$0xff]  }
 0x120   : > { %2849 = vmatmul.mubr.bf16.gmra.mxu0 %v4705_v44  ;;  %v4275_v44 = vld [vmem:[#allocation5 + $0x40c] ss:$16 sps:$4 sm:$0xff]   ;;  %v4315_v19 = vld [vmem:[#allocation5 + $0x528] ss:$16 sps:$4 sm:$0xff]  }
 0x121   : > { %2962 = vmatmul.mubr.bf16.gmra.mxu1 %v4707_v45  ;;  %3031 = vmatpush1.bf16.msra.mxu0 %v4255_v57  ;;  %v4278_v45 = vld [vmem:[#allocation5 + $0x60c] ss:$16 sps:$4 sm:$0xff]   ;;  %v4318_v57 = vld [vmem:[#allocation5 + $0x728] ss:$16 sps:$4 sm:$0xff]  }
 0x122   : > { %3144 = vmatpush1.bf16.msra.mxu1 %v4258_v58  ;;  %3032 = vmatprep.subr.bf16.mxu0 %v4263_v28  ;;  %v4321_v58 = vld [vmem:[#allocation5 + $0x508] ss:$16 sps:$4 sm:$0xff]  }
 0x123   : > { %3145 = vmatprep.subr.bf16.mxu1 %v4266_v29  ;;  %2858 = vmatprep.mubr.bf16.mxu0 %v4711_v50  ;;  %v4281_v50 = vld [vmem:[#allocation5 + $0x5ec] ss:$16 sps:$4 sm:$0xff]   ;;  %v4324_v28 = vld [vmem:[#allocation5 + $0x708] ss:$16 sps:$4 sm:$0xff]  }
 0x124   : > { %2971 = vmatprep.mubr.bf16.mxu1 %v4713_v51  ;;  %v4284_v51 = vld [vmem:[#allocation5 + $0x7ec] ss:$16 sps:$4 sm:$0xff]  }
 0x125   : > { %3033 = vmatpush1.bf16.msra.mxu0 %v4261_v56 }
 0x126   : > { %3146 = vmatpush1.bf16.msra.mxu1 %v4264_v40  ;;  %3034 = vmatprep.subr.bf16.mxu0 %v4269_v34 }
 0x127   : > { %3147 = vmatprep.subr.bf16.mxu1 %v4272_v35 }
 0x128   : > { %2859 = vmatmul.mubr.bf16.gmra.mxu0 %v4721_v61  ;;  %v4287_v61 = vld [vmem:[#allocation5 + $0x5cc] ss:$16 sps:$4 sm:$0xff]  }
 0x129   : > { %2972 = vmatmul.mubr.bf16.gmra.mxu1 %v4723_v62  ;;  %3035 = vmatpush1.bf16.msra.mxu0 %v4267_v48  ;;  %v4290_v62 = vld [vmem:[#allocation5 + $0x7cc] ss:$16 sps:$4 sm:$0xff]  }
 0x12a   : > { %3148 = vmatpush1.bf16.msra.mxu1 %v4270_v54  ;;  %3036 = vmatprep.subr.bf16.mxu0 %v4275_v44  ;;  %v5624_v44 = vld [vmem:[#allocation15_spill] sm:$0xff] }
 0x12b   : > { %3149 = vmatprep.subr.bf16.mxu1 %v4278_v45  ;;  %2868 = vmatprep.mubr.bf16.mxu0 %v4727_v4  ;;  %v4293_v4 = vld [vmem:[#allocation5 + $0x5ac] ss:$16 sps:$4 sm:$0xff]  }
 0x12c   : > { %2981 = vmatprep.mubr.bf16.mxu1 %v4729_v5  ;;  %v4296_v5 = vld [vmem:[#allocation5 + $0x7ac] ss:$16 sps:$4 sm:$0xff]  }
 0x12d   : > { %3037 = vmatpush1.bf16.msra.mxu0 %v4273_v41 }
 0x12e   : > { %3150 = vmatpush1.bf16.msra.mxu1 %v4276_v59  ;;  %3038 = vmatprep.subr.bf16.mxu0 %v4281_v50 }
 0x12f   : > { %3151 = vmatprep.subr.bf16.mxu1 %v4284_v51 }
 0x130   : > { %2869 = vmatmul.mubr.bf16.gmra.mxu0 %v4737_v14  ;;  %v4299_v14 = vld [vmem:[#allocation5 + $0x58c] ss:$16 sps:$4 sm:$0xff]  }
 0x131   : > { %2982 = vmatmul.mubr.bf16.gmra.mxu1 %v4739_v15  ;;  %3039 = vmatpush2.bf16.msra.mxu0 %v4279_v2  ;;  %v4302_v15 = vld [vmem:[#allocation5 + $0x78c] ss:$16 sps:$4 sm:$0xff]  }
 0x132   : > { %3152 = vmatpush2.bf16.msra.mxu1 %v4282_v43  ;;  %3040 = vmatprep.subr.bf16.mxu0 %v4287_v61 }
 0x133   : > { %3153 = vmatprep.subr.bf16.mxu1 %v4290_v62  ;;  %2878 = vmatprep.mubr.bf16.mxu0 %v4743_v24  ;;  %v4305_v24 = vld [vmem:[#allocation5 + $0x56c] ss:$16 sps:$4 sm:$0xff]   ;;  %v5625_v62 = vld [vmem:[#allocation16_spill] sm:$0xff] }
 0x134   : > { %2991 = vmatprep.mubr.bf16.mxu1 %v4745_v25  ;;  %v4308_v25 = vld [vmem:[#allocation5 + $0x76c] ss:$16 sps:$4 sm:$0xff]  }
 0x135   : > { %3041 = vmatpush2.bf16.msra.mxu0 %v4285_v3  ;;  %v5626_v3 = vld [vmem:[#allocation17_spill] sm:$0xff] }
 0x136   : > { %3154 = vmatpush2.bf16.msra.mxu1 %v4288_v53  ;;  %3042 = vmatprep.subr.bf16.mxu0 %v4293_v4  ;;  %v5627_v53 = vld [vmem:[#allocation18_spill] sm:$0xff]  ;;  %v5628_v4 = vld [vmem:[#allocation19_spill] sm:$0xff] }
 0x137   : > { %3155 = vmatprep.subr.bf16.mxu1 %v4296_v5 }
 0x138   : > { %2879 = vmatmul.mubr.bf16.gmra.mxu0 %v4752_v37  ;;  %v4311_v37 = vld [vmem:[#allocation5 + $0x54c] ss:$16 sps:$4 sm:$0xff]  }
 0x139   : > { %2992 = vmatmul.mubr.bf16.gmra.mxu1 %v4754_v38  ;;  %3043 = vmatpush2.bf16.msra.mxu0 %v4291_v55  ;;  %v4314_v38 = vld [vmem:[#allocation5 + $0x74c] ss:$16 sps:$4 sm:$0xff]  }
 0x13a   : > { %3156 = vmatpush2.bf16.msra.mxu1 %v4294_v8  ;;  %3044 = vmatprep.subr.bf16.mxu0 %v4299_v14 }
 0x13b   : > { %3157 = vmatprep.subr.bf16.mxu1 %v4302_v15  ;;  %2888 = vmatprep.mubr.bf16.mxu0 %v4759_v46  ;;  %v4317_v46 = vld [vmem:[#allocation5 + $0x52c] ss:$16 sps:$4 sm:$0xff]  }
 0x13c   : > { %3001 = vmatprep.mubr.bf16.mxu1 %v4761_v47  ;;  %v4320_v47 = vld [vmem:[#allocation5 + $0x72c] ss:$16 sps:$4 sm:$0xff]  }
 0x13d   : > { %3045 = vmatpush2.bf16.msra.mxu0 %v4297_v9 }
 0x13e   : > { %3158 = vmatpush2.bf16.msra.mxu1 %v4300_v11  ;;  %3046 = vmatprep.subr.bf16.mxu0 %v4305_v24 }
 0x13f   : > { %3159 = vmatprep.subr.bf16.mxu1 %v4308_v25  ;;  %v5629_v25 = vld [vmem:[#allocation20_spill] sm:$0xff] }
 0x140   : > { %2889 = vmatmul.mubr.bf16.gmra.mxu0 %v4769_v60  ;;  %v4323_v60 = vld [vmem:[#allocation5 + $0x50c] ss:$16 sps:$4 sm:$0xff]  }
 0x141   : > { %3002 = vmatmul.mubr.bf16.gmra.mxu1 %v4771_v63  ;;  %3047 = vmatpush2.bf16.msra.mxu0 %v4303_v12  ;;  %v4326_v63 = vld [vmem:[#allocation5 + $0x70c] ss:$16 sps:$4 sm:$0xff]  }
 0x142   : > { %3160 = vmatpush2.bf16.msra.mxu1 %v4306_v20  ;;  %3048 = vmatprep.subr.bf16.mxu0 %v4311_v37  ;;  %v5630_v12 = vld [vmem:[#allocation21_spill] sm:$0xff]  ;;  %v5631_v20 = vld [vmem:[#allocation22_spill] sm:$0xff]  ;;  %v5632_v37 = vld [vmem:[#allocation23_spill] sm:$0xff] }
 0x143   : > { %3161 = vmatprep.subr.bf16.mxu1 %v4314_v38  ;;  %2898 = vmatprep.mubr.bf16.mxu0 %v4775_v6 }
 0x144   : > { %3011 = vmatprep.mubr.bf16.mxu1 %v4777_v7 }
 0x145   : > { %3049 = vmatpush2.bf16.msra.mxu0 %v4309_v21 }
 0x146   : > { %3162 = vmatpush2.bf16.msra.mxu1 %v4312_v18  ;;  %3050 = vmatprep.subr.bf16.mxu0 %v4317_v46 }
 0x147   : > { %3163 = vmatprep.subr.bf16.mxu1 %v4320_v47 }
 0x148   : > { %2899 = vmatmul.mubr.bf16.gmra.mxu0 %v4785_v22 }
 0x149   : > { %3012 = vmatmul.mubr.bf16.gmra.mxu1 %v4787_v23  ;;  %3051 = vmatpush2.bf16.msra.mxu0 %v4315_v19 }
 0x14a   : > { %3164 = vmatpush2.bf16.msra.mxu1 %v4318_v57  ;;  %3052 = vmatprep.subr.bf16.mxu0 %v4323_v60 }
 0x14b   : > { %3165 = vmatprep.subr.bf16.mxu1 %v4326_v63  ;;  %3054 = vmatprep.mubr.bf16.mxu0 %v4791_v32  ;;  %v5633_v63 = vld [vmem:[#allocation24_spill] sm:$0xff] }
 0x14c   : > { %3167 = vmatprep.mubr.bf16.mxu1 %v4793_v33 }
 0x14d   : > { %3053 = vmatpush2.bf16.msra.mxu0 %v4321_v58  ;;  %v5634_v58 = vld [vmem:[#allocation25_spill] sm:$0xff] }
 0x14e   : > { %3166 = vmatpush2.bf16.msra.mxu1 %v4324_v28 }
 0x150   : > { %v4951_v6 = vpop.f32.mrf.mxu0  ;;  %3055 = vmatmul.mubr.bf16.vlgmr.msra.gmra.mxu0 %v4801_v49 }
 0x151   : > { %v4953_v7 = vpop.f32.mrf.mxu1  ;;  %3168 = vmatmul.mubr.bf16.vlgmr.msra.gmra.mxu1 %v4803_v52  ;;  %3064 = vmatprep.mubr.bf16.mxu0 %v4807_v0 }
 0x152   : > { %3177 = vmatprep.mubr.bf16.mxu1 %v4809_v1  ;;  %v4959_v22 = vpop.f32.mrf.mxu0 }
 0x153   : > { %v4961_v23 = vpop.f32.mrf.mxu1 }
 0x154   : > { %v4963_v32 = vpop.f32.mrf.mxu0 }
 0x155   : > { %v4965_v33 = vpop.f32.mrf.mxu1 }
 0x156   : > { %v4967_v29 = vpop.f32.mrf.mxu0 }
 0x157   : > { %v4969_v56 = vpop.f32.mrf.mxu1 }
 0x158   : > { %v4971_v40 = vpop.f32.mrf.mxu0  ;;  %3065 = vmatmul.mubr.bf16.gmra.mxu0 %v4817_v16 }
 0x159   : > { %v4973_v49 = vpop.f32.mrf.mxu1  ;;  %3178 = vmatmul.mubr.bf16.gmra.mxu1 %v4819_v17  ;;  %3074 = vmatprep.mubr.bf16.mxu0 %v4823_v36  ;;  %v5621_v17 = vld [vmem:[#allocation12_spill] sm:$0xff]  ;;  %v5622_v36 = vld [vmem:[#allocation13_spill] sm:$0xff] }
 0x15a   : > { %3187 = vmatprep.mubr.bf16.mxu1 %v4825_v39  ;;  %v4979_v52 = vpop.f32.mrf.mxu0  ;;  %v5623_v39 = vld [vmem:[#allocation14_spill] sm:$0xff] }
 0x15b   : > { %v4981_v0 = vpop.f32.mrf.mxu1 }
 0x15c   : > { %v4983_v1 = vpop.f32.mrf.mxu0 }
 0x15d   : > { %v4985_v34 = vpop.f32.mrf.mxu1 }
 0x15e   : > { %v4987_v35 = vpop.f32.mrf.mxu0 }
 0x15f   : > { %v4989_v48 = vpop.f32.mrf.mxu1 }
 0x160   : > { %v4991_v54 = vpop.f32.mrf.mxu0  ;;  %3075 = vmatmul.mubr.bf16.gmra.mxu0 %v5621_v17 }
 0x161   : > { %v4993_v16 = vpop.f32.mrf.mxu1  ;;  %3188 = vmatmul.mubr.bf16.gmra.mxu1 %v5622_v36  ;;  %3084 = vmatprep.mubr.bf16.mxu0 %v5623_v39 }
 0x162   : > { %3197 = vmatprep.mubr.bf16.mxu1 %v5624_v44  ;;  %v4999_v45 = vpop.f32.mrf.mxu0 }
 0x163   : > { %v5001_v41 = vpop.f32.mrf.mxu1 }
 0x164   : > { %v5003_v59 = vpop.f32.mrf.mxu0 }
 0x165   : > { %v5005_v50 = vpop.f32.mrf.mxu1 }
 0x166   : > { %v5007_v51 = vpop.f32.mrf.mxu0 }
 0x167   : > { %v5009_v2 = vpop.f32.mrf.mxu1 }
 0x168   : > { %v5011_v43 = vpop.f32.mrf.mxu0  ;;  %3085 = vmatmul.mubr.bf16.gmra.mxu0 %v5625_v62 }
 0x169   : > { %v5013_v61 = vpop.f32.mrf.mxu1  ;;  %3198 = vmatmul.mubr.bf16.gmra.mxu1 %v5626_v3  ;;  %3094 = vmatprep.mubr.bf16.mxu0 %v5627_v53 }
 0x16a   : > { %3207 = vmatprep.mubr.bf16.mxu1 %v5628_v4  ;;  %v5019_v5 = vpop.f32.mrf.mxu0 }
 0x16b   : > { %v5021_v55 = vpop.f32.mrf.mxu1 }
 0x16c   : > { %v5023_v8 = vpop.f32.mrf.mxu0 }
 0x16d   : > { %v5025_v14 = vpop.f32.mrf.mxu1 }
 0x16e   : > { %v5027_v15 = vpop.f32.mrf.mxu0 }
 0x16f   : > { %v5029_v9 = vpop.f32.mrf.mxu1 }
 0x170   : > { %v5031_v11 = vpop.f32.mrf.mxu0  ;;  %3095 = vmatmul.mubr.bf16.gmra.mxu0 %v5629_v25 }
 0x171   : > { %v5033_v24 = vpop.f32.mrf.mxu1  ;;  %3208 = vmatmul.mubr.bf16.gmra.mxu1 %v5630_v12  ;;  %3104 = vmatprep.mubr.bf16.mxu0 %v5631_v20  ;;  %v276_v20 = vlaneseq }
 0x172   : > { %3217 = vmatprep.mubr.bf16.mxu1 %v5632_v37  ;;  %v5039_v38 = vpop.f32.mrf.mxu0 }
 0x173   : > { %v5041_v21 = vpop.f32.mrf.mxu1 }
 0x174   : > { %v5043_v18 = vpop.f32.mrf.mxu0 }
 0x175   : > { %v5045_v46 = vpop.f32.mrf.mxu1 }
 0x176   : > { %v5047_v47 = vpop.f32.mrf.mxu0 }
 0x177   : > { %v5049_v19 = vpop.f32.mrf.mxu1 }
 0x178   : > { %v5051_v57 = vpop.f32.mrf.mxu0  ;;  %3105 = vmatmul.mubr.bf16.gmra.mxu0 %v5633_v63 }
 0x179   : > { %v5053_v60 = vpop.f32.mrf.mxu1  ;;  %3218 = vmatmul.mubr.bf16.gmra.mxu1 %v5634_v58  ;;  %3114 = vmatprep.mubr.bf16.mxu0 %v4887_v30  ;;  %v5638_v30 = vld [vmem:[#allocation26_spill] sm:$0xff] }
 0x17a   : > { %3227 = vmatprep.mubr.bf16.mxu1 %v4889_v31  ;;  %v5059_v28 = vpop.f32.mrf.mxu0 }
 0x17b   : > { %v5061_v17 = vpop.f32.mrf.mxu1 }
 0x17c   : > { %v5063_v36 = vpop.f32.mrf.mxu0 }
 0x17d   : > { %v5065_v39 = vpop.f32.mrf.mxu1 }
 0x17e   : > { %v5067_v44 = vpop.f32.mrf.mxu0 }
 0x17f   : > { %v5069_v62 = vpop.f32.mrf.mxu1 }
 0x180   : > { %5635 = vst [vmem:[#allocation12_spill] sm:$0xff] %v5069_v62  ;;  %v5071_v3 = vpop.f32.mrf.mxu0  ;;  %3115 = vmatmul.mubr.bf16.gmra.mxu0 %v4897_v42  ;;  %v2502_v62 = vadd.f32 %v4973_v49, %v4971_v40 }
 0x181   : > { %5636 = vst [vmem:[#allocation13_spill] sm:$0xff] %v5071_v3  ;;  %v5073_v53 = vpop.f32.mrf.mxu1  ;;  %3228 = vmatmul.mubr.bf16.gmra.mxu1 %v5638_v30  ;;  %3124 = vmatprep.mubr.bf16.mxu0 %v4903_v10  ;;  %v5097_v10 = vshrl.u32 %v276_v20, 7 }
 0x182   : > { %5637 = vst [vmem:[#allocation14_spill] sm:$0xff] %v5073_v53  ;;  %3237 = vmatprep.mubr.bf16.mxu1 %v4905_v13  ;;  %v5079_v31 = vpop.f32.mrf.mxu0 }
 0x183   : > { %5639 = vst [vmem:[#allocation15_spill] sm:$0xff] %v5079_v31  ;;  %v5081_v4 = vpop.f32.mrf.mxu1  ;;  %5647 = vst [vmem:[#allocation23_spill] sm:$0xff] %v5097_v10 }
 0x184   : > { %5640 = vst [vmem:[#allocation16_spill] sm:$0xff] %v5081_v4  ;;  %v5083_v25 = vpop.f32.mrf.mxu0 }
 0x185   : > { %5641 = vst [vmem:[#allocation17_spill] sm:$0xff] %v5083_v25  ;;  %v5085_v12 = vpop.f32.mrf.mxu1 }
 0x186   : > { %5642 = vst [vmem:[#allocation18_spill] sm:$0xff] %v5085_v12  ;;  %v5087_v37 = vpop.f32.mrf.mxu0 }
 0x187   : > { %5643 = vst [vmem:[#allocation19_spill] sm:$0xff] %v5087_v37  ;;  %v5089_v63 = vpop.f32.mrf.mxu1 }
 0x188   : > { %5644 = vst [vmem:[#allocation20_spill] sm:$0xff] %v5089_v63  ;;  %v5091_v42 = vpop.f32.mrf.mxu0  ;;  %3125 = vmatmul.mubr.bf16.gmra.mxu0 %v4911_v26  ;;  %v278_v63 = vsub.s32 0, %v5097_v10  ;;  %v2492_v26 = vadd.f32 %v4953_v7, %v4951_v6 }
 0x189   : > { %5645 = vst [vmem:[#allocation21_spill] sm:$0xff] %v5091_v42  ;;  %v5093_v58 = vpop.f32.mrf.mxu1  ;;  %3238 = vmatmul.mubr.bf16.gmra.mxu1 %v4913_v27  ;;  %v282_v27 = vsub.s32 1, %v5097_v10 }
 0x18a   : > { %5646 = vst [vmem:[#allocation22_spill] sm:$0xff] %v5093_v58  ;;  %v5099_v13 = vpop.f32.mrf.mxu0  ;;  %v5112_v58 = vld [vmem:[#allocation7] sm:$0xf] }
 0x18b   : > { %5648 = vst [vmem:[#allocation24_spill] sm:$0xff] %v5099_v13  ;;  %v5101_v30 = vpop.f32.mrf.mxu1  ;;  %v5125_v6 = vrot.slane %v5112_v58, %v282_v27 }
 0x18c   : > { %5649 = vst [vmem:[#allocation25_spill] sm:$0xff] %v5101_v30  ;;  %v5103_v12 = vpop.f32.mrf.mxu0 }
 0x18d   : > { %5650 = vst [vmem:[#allocation26_spill] sm:$0xff] %v5103_v12  ;;  %v5105_v25 = vpop.f32.mrf.mxu1  ;;  %v2494_v12 = vadd.f32 %v4961_v23, %v4959_v22  ;;  %v2498_v22 = vadd.f32 %v4969_v56, %v4967_v29 }
 0x18e   : > { %5651 = vst [vmem:[#allocation27_spill] sm:$0xff] %v5105_v25  ;;  %v5108_v37 = vpop.f32.mrf.mxu0  ;;  %v5120_v25 = vrot.slane %v5112_v58, %v278_v63 }
 0x18f   : > { %5652 = vst [vmem:[#allocation28_spill] sm:$0xff] %v5108_v37  ;;  %v5110_v42 = vpop.f32.mrf.mxu1 }
 0x190   : > { %5653 = vst [vmem:[#allocation29_spill] sm:$0xff] %v5110_v42  ;;  %v2604_v20 = vpop.f32.mrf.mxu0  ;;  %v2496_v42 = vadd.f32 %v4965_v33, %v4963_v32 }
 0x191   : > { %v2717_v13 = vpop.f32.mrf.mxu1  ;;  %v2605_v30 = vadd.f32 %v2604_v20, %v2492_v26 }
 0x192   : > { %v2606_v37 = vpop.f32.mrf.mxu0 }
 0x193   : > { %v2719_v4 = vpop.f32.mrf.mxu1  ;;  %v2718_v31 = vadd.f32 %v2717_v13, %v2605_v30  ;;  %v2607_v53 = vadd.f32 %v2606_v37, %v2494_v12 }
 0x194   : > { %v2608_v7 = vpop.f32.mrf.mxu0 }
 0x195   : > { %v2721_v10 = vpop.f32.mrf.mxu1  ;;  %v3248_v23 = vadd.f32 %v2718_v31, %v5120_v25  ;;  %v2720_v63 = vadd.f32 %v2719_v4, %v2607_v53  ;;  %v2609_v26 = vadd.f32 %v2608_v7, %v2496_v42  ;;  %v2504_v53 = vadd.f32 %v4981_v0, %v4979_v52 }
 0x196   : > { %v2610_v20 = vpop.f32.mrf.mxu0  ;;  %v2506_v42 = vadd.f32 %v4985_v34, %v4983_v1  ;;  %v2508_v52 = vadd.f32 %v4989_v48, %v4987_v35  ;;  %v2512_v1 = vadd.f32 %v4993_v16, %v4991_v54  ;;  %v2514_v35 = vadd.f32 %v5001_v41, %v4999_v45 }
 0x197   : > { %v2723_v3 = vpop.f32.mrf.mxu1  ;;  %3312 = vst [vmem:[%s5134_s20] sm:$0xff] %v3248_v23  ;;  %v3249_v32 = vadd.f32 %v2720_v63, %v5125_v6  ;;  %v2722_v33 = vadd.f32 %v2721_v10, %v2609_v26  ;;  %v2611_v29 = vadd.f32 %v2610_v20, %v2498_v22  ;;  %v2516_v54 = vadd.f32 %v5005_v50, %v5003_v59 }
 0x198   : > { %v2614_v56 = vpop.f32.mrf.mxu0  ;;  %v2518_v45 = vadd.f32 %v5009_v2, %v5007_v51  ;;  %v2522_v59 = vadd.f32 %v5013_v61, %v5011_v43  ;;  %v2524_v51 = vadd.f32 %v5021_v55, %v5019_v5  ;;  %v2526_v43 = vadd.f32 %v5025_v14, %v5023_v8 }
 0x199   : > { %v2727_v31 = vpop.f32.mrf.mxu1  ;;  %3313 = vst [vmem:[%s5134_s20 + $0x8] sm:$0xff] %v3249_v32  ;;  %v3252_v40 = vadd.f32 %v2722_v33, %v5120_v25  ;;  %v2724_v49 = vadd.f32 %v2723_v3, %v2611_v29  ;;  %v2615_v4 = vadd.f32 %v2614_v56, %v2502_v62  ;;  %v2528_v5 = vadd.f32 %v5029_v9, %v5027_v15 }
 0x19a   : > { %v2616_v12 = vpop.f32.mrf.mxu0  ;;  %v2532_v8 = vadd.f32 %v5033_v24, %v5031_v11  ;;  %v2534_v15 = vadd.f32 %v5041_v21, %v5039_v38  ;;  %v2536_v11 = vadd.f32 %v5045_v46, %v5043_v18  ;;  %v2538_v38 = vadd.f32 %v5049_v19, %v5047_v47 }
 0x19b   : > { %v2729_v37 = vpop.f32.mrf.mxu1  ;;  %3316 = vst [vmem:[%s5134_s20 + $0x20] sm:$0xff] %v3252_v40  ;;  %v3253_v10 = vadd.f32 %v2724_v49, %v5125_v6  ;;  %v2728_v13 = vadd.f32 %v2727_v31, %v2615_v4  ;;  %v2617_v30 = vadd.f32 %v2616_v12, %v2504_v53  ;;  %v2542_v18 = vadd.f32 %v5053_v60, %v5051_v57 }
 0x19c   : > { %v2618_v27 = vpop.f32.mrf.mxu0  ;;  %v2544_v47 = vadd.f32 %v5061_v17, %v5059_v28  ;;  %v2546_v57 = vadd.f32 %v5065_v39, %v5063_v36  ;;  %v5654_v28 = vld [vmem:[#allocation12_spill] sm:$0xff]  ;;  %v5656_v36 = vld [vmem:[#allocation14_spill] sm:$0xff] }
 0x19d   : > { %v2731_v7 = vpop.f32.mrf.mxu1  ;;  %3317 = vst [vmem:[%s5134_s20 + $0x28] sm:$0xff] %v3253_v10  ;;  %v3256_v0 = vadd.f32 %v2728_v13, %v5120_v25  ;;  %v2730_v62 = vadd.f32 %v2729_v37, %v2617_v30  ;;  %v2619_v3 = vadd.f32 %v2618_v27, %v2506_v42  ;;  %v2548_v17 = vadd.f32 %v5654_v28, %v5067_v44  ;;  %v5658_v44 = vld [vmem:[#allocation16_spill] sm:$0xff] }
 0x19e   : > { %v2620_v22 = vpop.f32.mrf.mxu0 }
 0x19f   : > { %v2733_v23 = vpop.f32.mrf.mxu1  ;;  %3320 = vst [vmem:[%s5134_s20 + $0x40] sm:$0xff] %v3256_v0  ;;  %v3257_v34 = vadd.f32 %v2730_v62, %v5125_v6  ;;  %v2732_v63 = vadd.f32 %v2731_v7, %v2619_v3  ;;  %v2621_v26 = vadd.f32 %v2620_v22, %v2508_v52 }
 0x1a0   : > { %v2624_v20 = vpop.f32.mrf.mxu0 }
 0x1a1   : > { %v2737_v32 = vpop.f32.mrf.mxu1  ;;  %3321 = vst [vmem:[%s5134_s20 + $0x48] sm:$0xff] %v3257_v34  ;;  %v3260_v48 = vadd.f32 %v2732_v63, %v5120_v25  ;;  %v2734_v33 = vadd.f32 %v2733_v23, %v2621_v26  ;;  %v2625_v29 = vadd.f32 %v2624_v20, %v2512_v1 }
 0x1a2   : > { %v2626_v56 = vpop.f32.mrf.mxu0 }
 0x1a3   : > { %v2739_v31 = vpop.f32.mrf.mxu1  ;;  %3324 = vst [vmem:[%s5134_s20 + $0x60] sm:$0xff] %v3260_v48  ;;  %v3261_v16 = vadd.f32 %v2734_v33, %v5125_v6  ;;  %v2738_v53 = vadd.f32 %v2737_v32, %v2625_v29  ;;  %v2627_v40 = vadd.f32 %v2626_v56, %v2514_v35 }
 0x1a4   : > { %v2628_v49 = vpop.f32.mrf.mxu0 }
 0x1a5   : > { %v2741_v4 = vpop.f32.mrf.mxu1  ;;  %3325 = vst [vmem:[%s5134_s20 + $0x68] sm:$0xff] %v3261_v16  ;;  %v3264_v41 = vadd.f32 %v2738_v53, %v5120_v25  ;;  %v2740_v12 = vadd.f32 %v2739_v31, %v2627_v40  ;;  %v2629_v37 = vadd.f32 %v2628_v49, %v2516_v54 }
 0x1a6   : > { %v2630_v42 = vpop.f32.mrf.mxu0 }
 0x1a7   : > { %v2743_v10 = vpop.f32.mrf.mxu1  ;;  %3328 = vst [vmem:[%s5134_s20 + $0x80] sm:$0xff] %v3264_v41  ;;  %v3265_v50 = vadd.f32 %v2740_v12, %v5125_v6  ;;  %v2742_v13 = vadd.f32 %v2741_v4, %v2629_v37  ;;  %v2631_v30 = vadd.f32 %v2630_v42, %v2518_v45 }
 0x1a8   : > { %v2634_v27 = vpop.f32.mrf.mxu0 }
 0x1a9   : > { %v2747_v7 = vpop.f32.mrf.mxu1  ;;  %3329 = vst [vmem:[%s5134_s20 + $0x88] sm:$0xff] %v3265_v50  ;;  %v3268_v2 = vadd.f32 %v2742_v13, %v5120_v25  ;;  %v2744_v52 = vadd.f32 %v2743_v10, %v2631_v30  ;;  %v2635_v0 = vadd.f32 %v2634_v27, %v2522_v59 }
 0x1aa   : > { %v2636_v62 = vpop.f32.mrf.mxu0 }
 0x1ab   : > { %v2749_v3 = vpop.f32.mrf.mxu1  ;;  %3332 = vst [vmem:[%s5134_s20 + $0xa0] sm:$0xff] %v3268_v2  ;;  %v3269_v61 = vadd.f32 %v2744_v52, %v5125_v6  ;;  %v2748_v22 = vadd.f32 %v2747_v7, %v2635_v0  ;;  %v2637_v23 = vadd.f32 %v2636_v62, %v2524_v51 }
 0x1ac   : > { %v2638_v1 = vpop.f32.mrf.mxu0 }
 0x1ad   : > { %v2751_v34 = vpop.f32.mrf.mxu1  ;;  %3333 = vst [vmem:[%s5134_s20 + $0xa8] sm:$0xff] %v3269_v61  ;;  %v3272_v55 = vadd.f32 %v2748_v22, %v5120_v25  ;;  %v2750_v63 = vadd.f32 %v2749_v3, %v2637_v23  ;;  %v2639_v26 = vadd.f32 %v2638_v1, %v2526_v43  ;;  %v5655_v23 = vld [vmem:[#allocation13_spill] sm:$0xff] }
 0x1ae   : > { %v2640_v20 = vpop.f32.mrf.mxu0  ;;  %v2552_v39 = vadd.f32 %v5656_v36, %v5655_v23 }
 0x1af   : > { %v2753_v32 = vpop.f32.mrf.mxu1  ;;  %3336 = vst [vmem:[%s5134_s20 + $0xc0] sm:$0xff] %v3272_v55  ;;  %v3273_v14 = vadd.f32 %v2750_v63, %v5125_v6  ;;  %v2752_v35 = vadd.f32 %v2751_v34, %v2639_v26  ;;  %v2641_v48 = vadd.f32 %v2640_v20, %v2528_v5  ;;  %v5657_v26 = vld [vmem:[#allocation15_spill] sm:$0xff] }
 0x1b0   : > { %v2644_v33 = vpop.f32.mrf.mxu0  ;;  %v2554_v20 = vadd.f32 %v5658_v44, %v5657_v26 }
 0x1b1   : > { %v2757_v29 = vpop.f32.mrf.mxu1  ;;  %3337 = vst [vmem:[%s5134_s20 + $0xc8] sm:$0xff] %v3273_v14  ;;  %v3276_v9 = vadd.f32 %v2752_v35, %v5120_v25  ;;  %v2754_v56 = vadd.f32 %v2753_v32, %v2641_v48  ;;  %v2645_v31 = vadd.f32 %v2644_v33, %v2532_v8  ;;  %v5659_v33 = vld [vmem:[#allocation17_spill] sm:$0xff] }
 0x1b2   : > { %v2646_v54 = vpop.f32.mrf.mxu0 }
 0x1b3   : > { %v2759_v16 = vpop.f32.mrf.mxu1  ;;  %3340 = vst [vmem:[%s5134_s20 + $0xe0] sm:$0xff] %v3276_v9  ;;  %v3277_v24 = vadd.f32 %v2754_v56, %v5125_v6  ;;  %v2758_v53 = vadd.f32 %v2757_v29, %v2645_v31  ;;  %v2647_v40 = vadd.f32 %v2646_v54, %v2534_v15  ;;  %v5660_v29 = vld [vmem:[#allocation18_spill] sm:$0xff] }
 0x1b4   : > { %v2648_v49 = vpop.f32.mrf.mxu0  ;;  %v2556_v15 = vadd.f32 %v5660_v29, %v5659_v33 }
 0x1b5   : > { %v2761_v4 = vpop.f32.mrf.mxu1  ;;  %3341 = vst [vmem:[%s5134_s20 + $0xe8] sm:$0xff] %v3277_v24  ;;  %v3280_v21 = vadd.f32 %v2758_v53, %v5120_v25  ;;  %v2760_v45 = vadd.f32 %v2759_v16, %v2647_v40  ;;  %v2649_v41 = vadd.f32 %v2648_v49, %v2536_v11  ;;  %v5661_v11 = vld [vmem:[#allocation19_spill] sm:$0xff]  ;;  %v5662_v24 = vld [vmem:[#allocation20_spill] sm:$0xff] }
 0x1b6   : > { %v2650_v12 = vpop.f32.mrf.mxu0  ;;  %v2558_v53 = vadd.f32 %v5662_v24, %v5661_v11 }
 0x1b7   : > { %v2763_v37 = vpop.f32.mrf.mxu1  ;;  %3344 = vst [vmem:[%s5134_s20 + $0x100] sm:$0xff] %v3280_v21  ;;  %v3281_v46 = vadd.f32 %v2760_v45, %v5125_v6  ;;  %v2762_v42 = vadd.f32 %v2761_v4, %v2649_v41  ;;  %v2651_v10 = vadd.f32 %v2650_v12, %v2538_v38  ;;  %v5663_v45 = vld [vmem:[#allocation21_spill] sm:$0xff]  ;;  %v5664_v41 = vld [vmem:[#allocation22_spill] sm:$0xff] }
 0x1b8   : > { %v2654_v59 = vpop.f32.mrf.mxu0  ;;  %v2562_v12 = vadd.f32 %v5664_v41, %v5663_v45 }
 0x1b9   : > { %v2767_v50 = vpop.f32.mrf.mxu1  ;;  %3345 = vst [vmem:[%s5134_s20 + $0x108] sm:$0xff] %v3281_v46  ;;  %v3284_v19 = vadd.f32 %v2762_v42, %v5120_v25  ;;  %v2764_v13 = vadd.f32 %v2763_v37, %v2651_v10  ;;  %v2655_v30 = vadd.f32 %v2654_v59, %v2542_v18  ;;  %v5665_v59 = vld [vmem:[#allocation24_spill] sm:$0xff] }
 0x1ba   : > { %v2656_v27 = vpop.f32.mrf.mxu0 }
 0x1bb   : > { %v2769_v7 = vpop.f32.mrf.mxu1  ;;  %3348 = vst [vmem:[%s5134_s20 + $0x120] sm:$0xff] %v3284_v19  ;;  %v3285_v60 = vadd.f32 %v2764_v13, %v5125_v6  ;;  %v2768_v51 = vadd.f32 %v2767_v50, %v2655_v30  ;;  %v2657_v2 = vadd.f32 %v2656_v27, %v2544_v47  ;;  %v5666_v50 = vld [vmem:[#allocation25_spill] sm:$0xff] }
 0x1bc   : > { %v2658_v52 = vpop.f32.mrf.mxu0  ;;  %v2564_v47 = vadd.f32 %v5666_v50, %v5665_v59 }
 0x1bd   : > { %v2771_v0 = vpop.f32.mrf.mxu1  ;;  %3349 = vst [vmem:[%s5134_s20 + $0x128] sm:$0xff] %v3285_v60  ;;  %v3288_v62 = vadd.f32 %v2768_v51, %v5120_v25  ;;  %v2770_v3 = vadd.f32 %v2769_v7, %v2657_v2  ;;  %v2659_v43 = vadd.f32 %v2658_v52, %v2546_v57  ;;  %v5667_v57 = vld [vmem:[#allocation26_spill] sm:$0xff]  ;;  %v5668_v60 = vld [vmem:[#allocation27_spill] sm:$0xff] }
 0x1be   : > { %v2660_v61 = vpop.f32.mrf.mxu0  ;;  %v2566_v51 = vadd.f32 %v5668_v60, %v5667_v57 }
 0x1bf   : > { %v2773_v22 = vpop.f32.mrf.mxu1  ;;  %3352 = vst [vmem:[%s5134_s20 + $0x140] sm:$0xff] %v3288_v62  ;;  %v3289_v1 = vadd.f32 %v2770_v3, %v5125_v6  ;;  %v2772_v34 = vadd.f32 %v2771_v0, %v2659_v43  ;;  %v2661_v5 = vadd.f32 %v2660_v61, %v2548_v17  ;;  %v5669_v62 = vld [vmem:[#allocation28_spill] sm:$0xff]  ;;  %v5670_v3 = vld [vmem:[#allocation29_spill] sm:$0xff] }
 0x1c0   : > { %v2664_v55 = vpop.f32.mrf.mxu0  ;;  %v2568_v43 = vadd.f32 %v5670_v3, %v5669_v62 }
 0x1c1   : > { %v2777_v63 = vpop.f32.mrf.mxu1  ;;  %3353 = vst [vmem:[%s5134_s20 + $0x148] sm:$0xff] %v3289_v1  ;;  %v3292_v32 = vadd.f32 %v2772_v34, %v5120_v25  ;;  %v2774_v8 = vadd.f32 %v2773_v22, %v2661_v5  ;;  %v2665_v14 = vadd.f32 %v2664_v55, %v2552_v39 }
 0x1c2   : > { %v2666_v35 = vpop.f32.mrf.mxu0 }
 0x1c3   : > { %v2779_v48 = vpop.f32.mrf.mxu1  ;;  %3356 = vst [vmem:[%s5134_s20 + $0x160] sm:$0xff] %v3292_v32  ;;  %v3293_v9 = vadd.f32 %v2774_v8, %v5125_v6  ;;  %v2778_v56 = vadd.f32 %v2777_v63, %v2665_v14  ;;  %v2667_v31 = vadd.f32 %v2666_v35, %v2554_v20 }
 0x1c4   : > { %v2668_v54 = vpop.f32.mrf.mxu0 }
 0x1c5   : > { %v2781_v16 = vpop.f32.mrf.mxu1  ;;  %3357 = vst [vmem:[%s5134_s20 + $0x168] sm:$0xff] %v3293_v9  ;;  %v3296_v40 = vadd.f32 %v2778_v56, %v5120_v25  ;;  %v2780_v49 = vadd.f32 %v2779_v48, %v2667_v31  ;;  %v2669_v4 = vadd.f32 %v2668_v54, %v2556_v15 }
 0x1c6   : > { %v2670_v38 = vpop.f32.mrf.mxu0 }
 0x1c7   : > { %v2783_v21 = vpop.f32.mrf.mxu1  ;;  %3360 = vst [vmem:[%s5134_s20 + $0x180] sm:$0xff] %v3296_v40  ;;  %v3297_v37 = vadd.f32 %v2780_v49, %v5125_v6  ;;  %v2782_v18 = vadd.f32 %v2781_v16, %v2669_v4  ;;  %v2671_v46 = vadd.f32 %v2670_v38, %v2558_v53 }
 0x1c8   : > { %v2674_v42 = vpop.f32.mrf.mxu0 }
 0x1c9   : > { %v2787_v10 = vpop.f32.mrf.mxu1  ;;  %3361 = vst [vmem:[%s5134_s20 + $0x188] sm:$0xff] %v3297_v37  ;;  %v3300_v19 = vadd.f32 %v2782_v18, %v5120_v25  ;;  %v2784_v13 = vadd.f32 %v2783_v21, %v2671_v46  ;;  %v2675_v30 = vadd.f32 %v2674_v42, %v2562_v12 }
 0x1ca   : > { %v2676_v27 = vpop.f32.mrf.mxu0 }
 0x1cb   : > { %v2789_v7 = vpop.f32.mrf.mxu1  ;;  %3364 = vst [vmem:[%s5134_s20 + $0x1a0] sm:$0xff] %v3300_v19  ;;  %v3301_v2 = vadd.f32 %v2784_v13, %v5125_v6  ;;  %v2788_v52 = vadd.f32 %v2787_v10, %v2675_v30  ;;  %v2677_v0 = vadd.f32 %v2676_v27, %v2564_v47 }
 0x1cc   : > { %v2678_v28 = vpop.f32.mrf.mxu0 }
 0x1cd   : > { %v2791_v17 = vpop.f32.mrf.mxu1  ;;  %3365 = vst [vmem:[%s5134_s20 + $0x1a8] sm:$0xff] %v3301_v2  ;;  %v3304_v61 = vadd.f32 %v2788_v52, %v5120_v25  ;;  %v2790_v22 = vadd.f32 %v2789_v7, %v2677_v0  ;;  %v2679_v23 = vadd.f32 %v2678_v28, %v2566_v51 }
 0x1ce   : > { %v2680_v36 = vpop.f32.mrf.mxu0 }
 0x1cf   : > { %v2793_v39 = vpop.f32.mrf.mxu1  ;;  %3368 = vst [vmem:[%s5134_s20 + $0x1c0] sm:$0xff] %v3304_v61  ;;  %v3305_v1 = vadd.f32 %v2790_v22, %v5125_v6  ;;  %v2792_v34 = vadd.f32 %v2791_v17, %v2679_v23  ;;  %v2681_v5 = vadd.f32 %v2680_v36, %v2568_v43 }
 0x1d0   : > { %v5248_v55 = vpop.f32.mrf.mxu0 }
 0x1d1   : > { %v5250_v63 = vpop.f32.mrf.mxu1  ;;  %3369 = vst [vmem:[%s5134_s20 + $0x1c8] sm:$0xff] %v3305_v1  ;;  %v3308_v26 = vadd.f32 %v2792_v34, %v5120_v25  ;;  %v2794_v44 = vadd.f32 %v2793_v39, %v2681_v5 }
 0x1d2   : > { %v5254_v20 = vpop.f32.mrf.mxu0 }
 0x1d3   : > { %v5256_v32 = vpop.f32.mrf.mxu1  ;;  %3372 = vst [vmem:[%s5134_s20 + $0x1e0] sm:$0xff] %v3308_v26  ;;  %v3309_v8 = vadd.f32 %v2794_v44, %v5125_v6 }
 0x1d4   : > { %v5260_v14 = vpop.f32.mrf.mxu0 }
 0x1d5   : > { %v5262_v35 = vpop.f32.mrf.mxu1  ;;  %3373 = vst [vmem:[%s5134_s20 + $0x1e8] sm:$0xff] %v3309_v8  ;;  %v5685_v8 = vld [vmem:[#allocation23_spill] sm:$0xff] }
 0x1d6   : > { %v5265_v48 = vpop.f32.mrf.mxu0 }
 0x1d7   : > { %v5267_v33 = vpop.f32.mrf.mxu1 }
 0x1d8   : > { %v5269_v29 = vpop.f32.mrf.mxu0 }
 0x1d9   : > { %v5271_v25 = vpop.f32.mrf.mxu1 }
 0x1da   : > { %v5273_v15 = vpop.f32.mrf.mxu0 }
 0x1db   : > { %v5275_v9 = vpop.f32.mrf.mxu1 }
 0x1dc   : > { %v5277_v56 = vpop.f32.mrf.mxu0 }
 0x1dd   : > { %v5279_v6 = vpop.f32.mrf.mxu1 }
 0x1de   : > { %v5281_v31 = vpop.f32.mrf.mxu0 }
 0x1df   : > { %v5283_v54 = vpop.f32.mrf.mxu1 }
 0x1e0   : > { %v5285_v16 = vpop.f32.mrf.mxu0 }
 0x1e1   : > { %v5287_v11 = vpop.f32.mrf.mxu1 }
 0x1e2   : > { %v5289_v24 = vpop.f32.mrf.mxu0 }
 0x1e3   : > { %v5291_v53 = vpop.f32.mrf.mxu1 }
 0x1e4   : > { %v5293_v40 = vpop.f32.mrf.mxu0 }
 0x1e5   : > { %v5295_v49 = vpop.f32.mrf.mxu1 }
 0x1e6   : > { %v5297_v4 = vpop.f32.mrf.mxu0 }
 0x1e7   : > { %v5299_v38 = vpop.f32.mrf.mxu1 }
 0x1e8   : > { %v5301_v21 = vpop.f32.mrf.mxu0 }
 0x1e9   : > { %v5303_v45 = vpop.f32.mrf.mxu1 }
 0x1ea   : > { %v5305_v41 = vpop.f32.mrf.mxu0 }
 0x1eb   : > { %v5307_v12 = vpop.f32.mrf.mxu1 }
 0x1ec   : > { %v5309_v37 = vpop.f32.mrf.mxu0 }
 0x1ed   : > { %v5311_v18 = vpop.f32.mrf.mxu1 }
 0x1ee   : > { %v5313_v46 = vpop.f32.mrf.mxu0 }
 0x1ef   : > { %v5315_v42 = vpop.f32.mrf.mxu1 }
 0x1f0   : > { %v5317_v10 = vpop.f32.mrf.mxu0 }
 0x1f1   : > { %v5319_v59 = vpop.f32.mrf.mxu1 }
 0x1f2   : > { %v5321_v50 = vpop.f32.mrf.mxu0 }
 0x1f3   : > { %v5323_v47 = vpop.f32.mrf.mxu1 }
 0x1f4   : > { %v5325_v19 = vpop.f32.mrf.mxu0 }
 0x1f5   : > { %v5327_v13 = vpop.f32.mrf.mxu1 }
 0x1f6   : > { %v5329_v30 = vpop.f32.mrf.mxu0 }
 0x1f7   : > { %v5331_v27 = vpop.f32.mrf.mxu1 }
 0x1f8   : > { %v5333_v7 = vpop.f32.mrf.mxu0 }
 0x1f9   : > { %v5335_v57 = vpop.f32.mrf.mxu1 }
 0x1fa   : > { %v5337_v60 = vpop.f32.mrf.mxu0 }
 0x1fb   : > { %v5339_v51 = vpop.f32.mrf.mxu1 }
 0x1fc   : > { %v5341_v2 = vpop.f32.mrf.mxu0 }
 0x1fd   : > { %v5343_v52 = vpop.f32.mrf.mxu1 }
 0x1fe   : > { %v5345_v0 = vpop.f32.mrf.mxu0 }
 0x1ff   : > { %v5347_v28 = vpop.f32.mrf.mxu1 }
 0x200   : > { %v5349_v17 = vpop.f32.mrf.mxu0 }
 0x201   : > { %5671 = vst [vmem:[#allocation12_spill] sm:$0xff] %v5349_v17  ;;  %v5351_v62 = vpop.f32.mrf.mxu1 }
 0x202   : > { %5672 = vst [vmem:[#allocation13_spill] sm:$0xff] %v5351_v62  ;;  %v5353_v3 = vpop.f32.mrf.mxu0 }
 0x203   : > { %5673 = vst [vmem:[#allocation14_spill] sm:$0xff] %v5353_v3  ;;  %v5355_v43 = vpop.f32.mrf.mxu1 }
 0x204   : > { %5674 = vst [vmem:[#allocation15_spill] sm:$0xff] %v5355_v43  ;;  %v5357_v61 = vpop.f32.mrf.mxu0 }
 0x205   : > { %5675 = vst [vmem:[#allocation16_spill] sm:$0xff] %v5357_v61  ;;  %v5359_v22 = vpop.f32.mrf.mxu1  ;;  %v286_v61 = vsub.s32 2, %v5685_v8 }
 0x206   : > { %5676 = vst [vmem:[#allocation17_spill] sm:$0xff] %v5359_v22  ;;  %v5361_v23 = vpop.f32.mrf.mxu0 }
 0x207   : > { %5677 = vst [vmem:[#allocation18_spill] sm:$0xff] %v5361_v23  ;;  %v5363_v36 = vpop.f32.mrf.mxu1 }
 0x208   : > { %5678 = vst [vmem:[#allocation19_spill] sm:$0xff] %v5363_v36  ;;  %v5365_v39 = vpop.f32.mrf.mxu0  ;;  %v2944_v36 = vadd.f32 %v5250_v63, %v5248_v55 }
 0x209   : > { %5679 = vst [vmem:[#allocation20_spill] sm:$0xff] %v5365_v39  ;;  %v5367_v1 = vpop.f32.mrf.mxu1  ;;  %v290_v39 = vsub.s32 3, %v5685_v8 }
 0x20a   : > { %5680 = vst [vmem:[#allocation21_spill] sm:$0xff] %v5367_v1  ;;  %v5369_v34 = vpop.f32.mrf.mxu0 }
 0x20b   : > { %5681 = vst [vmem:[#allocation22_spill] sm:$0xff] %v5369_v34  ;;  %v5371_v5 = vpop.f32.mrf.mxu1  ;;  %v5393_v55 = vrot.slane %v5112_v58, %v290_v39 }
 0x20c   : > { %5682 = vst [vmem:[#allocation24_spill] sm:$0xff] %v5371_v5  ;;  %v5373_v26 = vpop.f32.mrf.mxu0  ;;  %v2946_v5 = vadd.f32 %v5256_v32, %v5254_v20  ;;  %v2950_v20 = vadd.f32 %v5267_v33, %v5265_v48  ;;  %v2956_v48 = vadd.f32 %v5275_v9, %v5273_v15  ;;  %v2960_v15 = vadd.f32 %v5283_v54, %v5281_v31 }
 0x20d   : > { %5683 = vst [vmem:[#allocation25_spill] sm:$0xff] %v5373_v26  ;;  %v5375_v44 = vpop.f32.mrf.mxu1  ;;  %v5388_v26 = vrot.slane %v5112_v58, %v286_v61  ;;  %v2966_v31 = vadd.f32 %v5291_v53, %v5289_v24  ;;  %v2970_v24 = vadd.f32 %v5299_v38, %v5297_v4  ;;  %v2976_v4 = vadd.f32 %v5307_v12, %v5305_v41 }
 0x20e   : > { %5684 = vst [vmem:[#allocation26_spill] sm:$0xff] %v5375_v44  ;;  %v5378_v43 = vpop.f32.mrf.mxu0  ;;  %v2980_v41 = vadd.f32 %v5315_v42, %v5313_v46  ;;  %v2986_v46 = vadd.f32 %v5323_v47, %v5321_v50  ;;  %v2990_v50 = vadd.f32 %v5331_v27, %v5329_v30  ;;  %v2996_v30 = vadd.f32 %v5339_v51, %v5337_v60 }
 0x20f   : > { %5686 = vst [vmem:[#allocation27_spill] sm:$0xff] %v5378_v43  ;;  %v5380_v22 = vpop.f32.mrf.mxu1  ;;  %v3000_v60 = vadd.f32 %v5347_v28, %v5345_v0  ;;  %v5691_v0 = vld [vmem:[#allocation15_spill] sm:$0xff] }
 0x210   : > { %5687 = vst [vmem:[#allocation28_spill] sm:$0xff] %v5380_v22  ;;  %v3056_v1 = vpop.f32.mrf.mxu0  ;;  %v2948_v22 = vadd.f32 %v5262_v35, %v5260_v14  ;;  %v2954_v14 = vadd.f32 %v5271_v25, %v5269_v29  ;;  %v2958_v29 = vadd.f32 %v5279_v6, %v5277_v56  ;;  %v2964_v56 = vadd.f32 %v5287_v11, %v5285_v16 }
 0x211   : > { %v3169_v23 = vpop.f32.mrf.mxu1  ;;  %v3057_v34 = vadd.f32 %v3056_v1, %v2944_v36  ;;  %v2968_v16 = vadd.f32 %v5295_v49, %v5293_v40  ;;  %v2974_v40 = vadd.f32 %v5303_v45, %v5301_v21  ;;  %v2978_v21 = vadd.f32 %v5311_v18, %v5309_v37 }
 0x212   : > { %v3058_v44 = vpop.f32.mrf.mxu0  ;;  %v2984_v37 = vadd.f32 %v5319_v59, %v5317_v10  ;;  %v2988_v10 = vadd.f32 %v5327_v13, %v5325_v19  ;;  %v2994_v19 = vadd.f32 %v5335_v57, %v5333_v7  ;;  %v2998_v7 = vadd.f32 %v5343_v52, %v5341_v2  ;;  %v5689_v2 = vld [vmem:[#allocation13_spill] sm:$0xff] }
 0x213   : > { %v3171_v3 = vpop.f32.mrf.mxu1  ;;  %v3170_v43 = vadd.f32 %v3169_v23, %v3057_v34  ;;  %v3059_v62 = vadd.f32 %v3058_v44, %v2946_v5 }
 0x214   : > { %v3060_v63 = vpop.f32.mrf.mxu0 }
 0x215   : > { %v3173_v8 = vpop.f32.mrf.mxu1  ;;  %v3250_v32 = vadd.f32 %v3170_v43, %v5388_v26  ;;  %v3172_v61 = vadd.f32 %v3171_v3, %v3059_v62  ;;  %v3061_v36 = vadd.f32 %v3060_v63, %v2948_v22 }
 0x216   : > { %v3062_v1 = vpop.f32.mrf.mxu0 }
 0x217   : > { %v3175_v17 = vpop.f32.mrf.mxu1  ;;  %3314 = vst [vmem:[%s5134_s20 + $0x10] sm:$0xff] %v3250_v32  ;;  %v3251_v58 = vadd.f32 %v3172_v61, %v5393_v55  ;;  %v3174_v35 = vadd.f32 %v3173_v8, %v3061_v36  ;;  %v3063_v23 = vadd.f32 %v3062_v1, %v2950_v20 }
 0x218   : > { %v3066_v39 = vpop.f32.mrf.mxu0 }
 0x219   : > { %v3179_v34 = vpop.f32.mrf.mxu1  ;;  %3315 = vst [vmem:[%s5134_s20 + $0x18] sm:$0xff] %v3251_v58  ;;  %v3254_v33 = vadd.f32 %v3174_v35, %v5388_v26  ;;  %v3176_v62 = vadd.f32 %v3175_v17, %v3063_v23  ;;  %v3067_v3 = vadd.f32 %v3066_v39, %v2954_v14 }
 0x21a   : > { %v3068_v43 = vpop.f32.mrf.mxu0 }
 0x21b   : > { %v3181_v22 = vpop.f32.mrf.mxu1  ;;  %3318 = vst [vmem:[%s5134_s20 + $0x30] sm:$0xff] %v3254_v33  ;;  %v3255_v25 = vadd.f32 %v3176_v62, %v5393_v55  ;;  %v3180_v5 = vadd.f32 %v3179_v34, %v3067_v3  ;;  %v3069_v44 = vadd.f32 %v3068_v43, %v2956_v48 }
 0x21c   : > { %v3070_v63 = vpop.f32.mrf.mxu0 }
 0x21d   : > { %v3183_v8 = vpop.f32.mrf.mxu1  ;;  %3319 = vst [vmem:[%s5134_s20 + $0x38] sm:$0xff] %v3255_v25  ;;  %v3258_v9 = vadd.f32 %v3180_v5, %v5388_v26  ;;  %v3182_v17 = vadd.f32 %v3181_v22, %v3069_v44  ;;  %v3071_v20 = vadd.f32 %v3070_v63, %v2958_v29 }
 0x21e   : > { %v3072_v32 = vpop.f32.mrf.mxu0 }
 0x21f   : > { %v3185_v61 = vpop.f32.mrf.mxu1  ;;  %3322 = vst [vmem:[%s5134_s20 + $0x50] sm:$0xff] %v3258_v9  ;;  %v3259_v6 = vadd.f32 %v3182_v17, %v5393_v55  ;;  %v3184_v36 = vadd.f32 %v3183_v8, %v3071_v20  ;;  %v3073_v1 = vadd.f32 %v3072_v32, %v2960_v15 }
 0x220   : > { %v3076_v14 = vpop.f32.mrf.mxu0 }
 0x221   : > { %v3189_v58 = vpop.f32.mrf.mxu1  ;;  %3323 = vst [vmem:[%s5134_s20 + $0x58] sm:$0xff] %v3259_v6  ;;  %v3262_v54 = vadd.f32 %v3184_v36, %v5388_v26  ;;  %v3186_v35 = vadd.f32 %v3185_v61, %v3073_v1  ;;  %v3077_v23 = vadd.f32 %v3076_v14, %v2964_v56 }
 0x222   : > { %v3078_v39 = vpop.f32.mrf.mxu0 }
 0x223   : > { %v3191_v34 = vpop.f32.mrf.mxu1  ;;  %3326 = vst [vmem:[%s5134_s20 + $0x70] sm:$0xff] %v3262_v54  ;;  %v3263_v11 = vadd.f32 %v3186_v35, %v5393_v55  ;;  %v3190_v48 = vadd.f32 %v3189_v58, %v3077_v23  ;;  %v3079_v33 = vadd.f32 %v3078_v39, %v2966_v31 }
 0x224   : > { %v3080_v62 = vpop.f32.mrf.mxu0 }
 0x225   : > { %v3193_v3 = vpop.f32.mrf.mxu1  ;;  %3327 = vst [vmem:[%s5134_s20 + $0x78] sm:$0xff] %v3263_v11  ;;  %v3266_v53 = vadd.f32 %v3190_v48, %v5388_v26  ;;  %v3192_v43 = vadd.f32 %v3191_v34, %v3079_v33  ;;  %v3081_v22 = vadd.f32 %v3080_v62, %v2968_v16 }
 0x226   : > { %v3082_v29 = vpop.f32.mrf.mxu0 }
 0x227   : > { %v3195_v25 = vpop.f32.mrf.mxu1  ;;  %3330 = vst [vmem:[%s5134_s20 + $0x90] sm:$0xff] %v3266_v53  ;;  %v3267_v49 = vadd.f32 %v3192_v43, %v5393_v55  ;;  %v3194_v5 = vadd.f32 %v3193_v3, %v3081_v22  ;;  %v3083_v44 = vadd.f32 %v3082_v29, %v2970_v24 }
 0x228   : > { %v3086_v63 = vpop.f32.mrf.mxu0 }
 0x229   : > { %v3199_v8 = vpop.f32.mrf.mxu1  ;;  %3331 = vst [vmem:[%s5134_s20 + $0x98] sm:$0xff] %v3267_v49  ;;  %v3270_v38 = vadd.f32 %v3194_v5, %v5388_v26  ;;  %v3196_v15 = vadd.f32 %v3195_v25, %v3083_v44  ;;  %v3087_v9 = vadd.f32 %v3086_v63, %v2974_v40 }
 0x22a   : > { %v3088_v17 = vpop.f32.mrf.mxu0 }
 0x22b   : > { %v3201_v20 = vpop.f32.mrf.mxu1  ;;  %3334 = vst [vmem:[%s5134_s20 + $0xb0] sm:$0xff] %v3270_v38  ;;  %v3271_v45 = vadd.f32 %v3196_v15, %v5393_v55  ;;  %v3200_v32 = vadd.f32 %v3199_v8, %v3087_v9  ;;  %v3089_v61 = vadd.f32 %v3088_v17, %v2976_v4 }
 0x22c   : > { %v3090_v56 = vpop.f32.mrf.mxu0 }
 0x22d   : > { %v3203_v6 = vpop.f32.mrf.mxu1  ;;  %3335 = vst [vmem:[%s5134_s20 + $0xb8] sm:$0xff] %v3271_v45  ;;  %v3274_v12 = vadd.f32 %v3200_v32, %v5388_v26  ;;  %v3202_v36 = vadd.f32 %v3201_v20, %v3089_v61  ;;  %v3091_v1 = vadd.f32 %v3090_v56, %v2978_v21  ;;  %v5688_v32 = vld [vmem:[#allocation12_spill] sm:$0xff] }
 0x22e   : > { %v3092_v14 = vpop.f32.mrf.mxu0  ;;  %v3004_v52 = vadd.f32 %v5689_v2, %v5688_v32 }
 0x22f   : > { %v3205_v58 = vpop.f32.mrf.mxu1  ;;  %3338 = vst [vmem:[%s5134_s20 + $0xd0] sm:$0xff] %v3274_v12  ;;  %v3275_v18 = vadd.f32 %v3202_v36, %v5393_v55  ;;  %v3204_v31 = vadd.f32 %v3203_v6, %v3091_v1  ;;  %v3093_v54 = vadd.f32 %v3092_v14, %v2980_v41  ;;  %v5690_v36 = vld [vmem:[#allocation14_spill] sm:$0xff] }
 0x230   : > { %v3096_v35 = vpop.f32.mrf.mxu0  ;;  %v3006_v28 = vadd.f32 %v5691_v0, %v5690_v36 }
 0x231   : > { %v3209_v23 = vpop.f32.mrf.mxu1  ;;  %3339 = vst [vmem:[%s5134_s20 + $0xd8] sm:$0xff] %v3275_v18  ;;  %v3278_v42 = vadd.f32 %v3204_v31, %v5388_v26  ;;  %v3206_v39 = vadd.f32 %v3205_v58, %v3093_v54  ;;  %v3097_v34 = vadd.f32 %v3096_v35, %v2984_v37  ;;  %v5692_v31 = vld [vmem:[#allocation16_spill] sm:$0xff]  ;;  %v5693_v54 = vld [vmem:[#allocation17_spill] sm:$0xff] }
 0x232   : > { %v3098_v16 = vpop.f32.mrf.mxu0  ;;  %v3008_v35 = vadd.f32 %v5693_v54, %v5692_v31 }
 0x233   : > { %v3211_v11 = vpop.f32.mrf.mxu1  ;;  %3342 = vst [vmem:[%s5134_s20 + $0xf0] sm:$0xff] %v3278_v42  ;;  %v3279_v59 = vadd.f32 %v3206_v39, %v5393_v55  ;;  %v3210_v48 = vadd.f32 %v3209_v23, %v3097_v34  ;;  %v3099_v33 = vadd.f32 %v3098_v16, %v2986_v46  ;;  %v5694_v16 = vld [vmem:[#allocation18_spill] sm:$0xff] }
 0x234   : > { %v3100_v62 = vpop.f32.mrf.mxu0 }
 0x235   : > { %v3213_v3 = vpop.f32.mrf.mxu1  ;;  %3343 = vst [vmem:[%s5134_s20 + $0xf8] sm:$0xff] %v3279_v59  ;;  %v3282_v47 = vadd.f32 %v3210_v48, %v5388_v26  ;;  %v3212_v24 = vadd.f32 %v3211_v11, %v3099_v33  ;;  %v3101_v53 = vadd.f32 %v3100_v62, %v2988_v10  ;;  %v5695_v11 = vld [vmem:[#allocation19_spill] sm:$0xff] }
 0x236   : > { %v3102_v43 = vpop.f32.mrf.mxu0  ;;  %v3010_v10 = vadd.f32 %v5695_v11, %v5694_v16 }
 0x237   : > { %v3215_v22 = vpop.f32.mrf.mxu1  ;;  %3346 = vst [vmem:[%s5134_s20 + $0x110] sm:$0xff] %v3282_v47  ;;  %v3283_v13 = vadd.f32 %v3212_v24, %v5393_v55  ;;  %v3214_v29 = vadd.f32 %v3213_v3, %v3101_v53  ;;  %v3103_v25 = vadd.f32 %v3102_v43, %v2990_v50  ;;  %v5696_v50 = vld [vmem:[#allocation20_spill] sm:$0xff]  ;;  %v5697_v47 = vld [vmem:[#allocation21_spill] sm:$0xff] }
 0x238   : > { %v3106_v40 = vpop.f32.mrf.mxu0  ;;  %v3014_v24 = vadd.f32 %v5697_v47, %v5696_v50 }
 0x239   : > { %v3219_v49 = vpop.f32.mrf.mxu1  ;;  %3347 = vst [vmem:[%s5134_s20 + $0x118] sm:$0xff] %v3283_v13  ;;  %v3286_v27 = vadd.f32 %v3214_v29, %v5388_v26  ;;  %v3216_v5 = vadd.f32 %v3215_v22, %v3103_v25  ;;  %v3107_v44 = vadd.f32 %v3106_v40, %v2994_v19  ;;  %v5698_v29 = vld [vmem:[#allocation22_spill] sm:$0xff]  ;;  %v5699_v25 = vld [vmem:[#allocation24_spill] sm:$0xff] }
 0x23a   : > { %v3108_v63 = vpop.f32.mrf.mxu0  ;;  %v3016_v40 = vadd.f32 %v5699_v25, %v5698_v29 }
 0x23b   : > { %v3221_v8 = vpop.f32.mrf.mxu1  ;;  %3350 = vst [vmem:[%s5134_s20 + $0x130] sm:$0xff] %v3286_v27  ;;  %v3287_v57 = vadd.f32 %v3216_v5, %v5393_v55  ;;  %v3220_v4 = vadd.f32 %v3219_v49, %v3107_v44  ;;  %v3109_v38 = vadd.f32 %v3108_v63, %v2996_v30  ;;  %v5700_v63 = vld [vmem:[#allocation25_spill] sm:$0xff] }
 0x23c   : > { %v3110_v15 = vpop.f32.mrf.mxu0 }
 0x23d   : > { %v3223_v9 = vpop.f32.mrf.mxu1  ;;  %3351 = vst [vmem:[%s5134_s20 + $0x138] sm:$0xff] %v3287_v57  ;;  %v3290_v51 = vadd.f32 %v3220_v4, %v5388_v26  ;;  %v3222_v17 = vadd.f32 %v3221_v8, %v3109_v38  ;;  %v3111_v20 = vadd.f32 %v3110_v15, %v2998_v7  ;;  %v5701_v8 = vld [vmem:[#allocation26_spill] sm:$0xff] }
 0x23e   : > { %v3112_v21 = vpop.f32.mrf.mxu0  ;;  %v3018_v7 = vadd.f32 %v5701_v8, %v5700_v63 }
 0x23f   : > { %v3225_v45 = vpop.f32.mrf.mxu1  ;;  %3354 = vst [vmem:[%s5134_s20 + $0x150] sm:$0xff] %v3290_v51  ;;  %v3291_v61 = vadd.f32 %v3222_v17, %v5393_v55  ;;  %v3224_v56 = vadd.f32 %v3223_v9, %v3111_v20  ;;  %v3113_v6 = vadd.f32 %v3112_v21, %v3000_v60  ;;  %v5702_v60 = vld [vmem:[#allocation27_spill] sm:$0xff]  ;;  %v5703_v51 = vld [vmem:[#allocation28_spill] sm:$0xff] }
 0x240   : > { %v3116_v41 = vpop.f32.mrf.mxu0  ;;  %v3020_v17 = vadd.f32 %v5703_v51, %v5702_v60 }
 0x241   : > { %v3229_v12 = vpop.f32.mrf.mxu1  ;;  %3355 = vst [vmem:[%s5134_s20 + $0x158] sm:$0xff] %v3291_v61  ;;  %v3294_v1 = vadd.f32 %v3224_v56, %v5388_v26  ;;  %v3226_v14 = vadd.f32 %v3225_v45, %v3113_v6  ;;  %v3117_v58 = vadd.f32 %v3116_v41, %v3004_v52 }
 0x242   : > { %v3118_v37 = vpop.f32.mrf.mxu0 }
 0x243   : > { %v3231_v18 = vpop.f32.mrf.mxu1  ;;  %3358 = vst [vmem:[%s5134_s20 + $0x170] sm:$0xff] %v3294_v1  ;;  %v3295_v23 = vadd.f32 %v3226_v14, %v5393_v55  ;;  %v3230_v46 = vadd.f32 %v3229_v12, %v3117_v58  ;;  %v3119_v42 = vadd.f32 %v3118_v37, %v3006_v28 }
 0x244   : > { %v3120_v39 = vpop.f32.mrf.mxu0 }
 0x245   : > { %v3233_v34 = vpop.f32.mrf.mxu1  ;;  %3359 = vst [vmem:[%s5134_s20 + $0x178] sm:$0xff] %v3295_v23  ;;  %v3298_v59 = vadd.f32 %v3230_v46, %v5388_v26  ;;  %v3232_v48 = vadd.f32 %v3231_v18, %v3119_v42  ;;  %v3121_v33 = vadd.f32 %v3120_v39, %v3008_v35 }
 0x246   : > { %v3122_v62 = vpop.f32.mrf.mxu0 }
 0x247   : > { %v3235_v3 = vpop.f32.mrf.mxu1  ;;  %3362 = vst [vmem:[%s5134_s20 + $0x190] sm:$0xff] %v3298_v59  ;;  %v3299_v53 = vadd.f32 %v3232_v48, %v5393_v55  ;;  %v3234_v43 = vadd.f32 %v3233_v34, %v3121_v33  ;;  %v3123_v22 = vadd.f32 %v3122_v62, %v3010_v10 }
 0x248   : > { %v3126_v19 = vpop.f32.mrf.mxu0 }
 0x249   : > { %v3239_v13 = vpop.f32.mrf.mxu1  ;;  %3363 = vst [vmem:[%s5134_s20 + $0x198] sm:$0xff] %v3299_v53  ;;  %v3302_v49 = vadd.f32 %v3234_v43, %v5388_v26  ;;  %v3236_v30 = vadd.f32 %v3235_v3, %v3123_v22  ;;  %v3127_v27 = vadd.f32 %v3126_v19, %v3014_v24 }
 0x24a   : > { %v3128_v5 = vpop.f32.mrf.mxu0 }
 0x24b   : > { %v3241_v44 = vpop.f32.mrf.mxu1  ;;  %3366 = vst [vmem:[%s5134_s20 + $0x1b0] sm:$0xff] %v3302_v49  ;;  %v3303_v57 = vadd.f32 %v3236_v30, %v5393_v55  ;;  %v3240_v4 = vadd.f32 %v3239_v13, %v3127_v27  ;;  %v3129_v38 = vadd.f32 %v3128_v5, %v3016_v40 }
 0x24c   : > { %v3130_v15 = vpop.f32.mrf.mxu0 }
 0x24d   : > { %v3243_v9 = vpop.f32.mrf.mxu1  ;;  %3367 = vst [vmem:[%s5134_s20 + $0x1b8] sm:$0xff] %v3303_v57  ;;  %v3306_v20 = vadd.f32 %v3240_v4, %v5388_v26  ;;  %v3242_v21 = vadd.f32 %v3241_v44, %v3129_v38  ;;  %v3131_v45 = vadd.f32 %v3130_v15, %v3018_v7 }
 0x24e   : > { %v3132_v32 = vpop.f32.mrf.mxu0 }
 0x24f   : > { %3370 = vst [vmem:[%s5134_s20 + $0x1d0] sm:$0xff] %v3306_v20  ;;  %v3307_v2 = vadd.f32 %v3242_v21, %v5393_v55  ;;  %v3244_v52 = vadd.f32 %v3243_v9, %v3131_v45  ;;  %v3133_v61 = vadd.f32 %v3132_v32, %v3020_v17  ;;  %v3245_v56 = vpop.f32.mrf.mxu1 }
 0x251   : > { %3371 = vst [vmem:[%s5134_s20 + $0x1d8] sm:$0xff] %v3307_v2  ;;  %v3310_v6 = vadd.f32 %v3244_v52, %v5388_v26  ;;  %v3246_v41 = vadd.f32 %v3245_v56, %v3133_v61 }
 0x253   : > { %3374 = vst [vmem:[%s5134_s20 + $0x1f0] sm:$0xff] %v3310_v6  ;;  %v3311_v12 = vadd.f32 %v3246_v41, %v5393_v55 }
 0x255   : > { %3375 = vst [vmem:[%s5134_s20 + $0x1f8] sm:$0xff] %v3311_v12 }
 0x256   : > { %4420 = shalt.err (!%p4417_p5)
}
 0x257   : > { %s4421_s25 = scalar_lea.hbm %s5519_s21, 8192  ;;  %s4425_s30 = scalar_lea.hbm %s5575_s3, 16384 }
 0x258   : > { %p4422_p10 = scmp.ne.s32.totalorder %s5519_s21, %s4421_s25  ;;  %p4426_p6 = scmp.lt.s32.totalorder %s5519_s21, %s5575_s3 }
 0x259   : > { %p4427_p12 = scmp.lt.s32.totalorder %s4425_s30, %s4421_s25 }
 0x25a   : > { %p4423_p1 = pnand %p4422_p10, %p4618_p7 }
 0x25b   : > { %p4428_p3 = por %p4427_p12, %p4426_p6 }
 0x25c   : > { %p4424_p4 = pneg %p4423_p1 }
 0x25e   : > { %p4429_p8 = pnand %p4428_p3, %p4424_p4 }
 0x260   : > { %4432 = shalt.err (!%p4429_p8)
}
 0x261   : > { %s4501_s20 = smov 512   ;;  %s4502_s22 = smov 32  }
 0x262   : > { %3864 = dma.vmem_to_hbm [thread:$0]  (%p4618_p7), %s5521_s24, 8192, %s5519_s21, %s3377_s15, %s4501_s20, %s4501_s20, %s4502_s22  }
 0x263 PF: > { %s3408_s5 = sand.u32 1, %s4471_s12   ;;  %p5704_p9 = scmp.ne.s32.totalorder %s5599_s23, 0 }
 0x264   : > { %p5705_p11 = scmp.ge.s32.totalorder %s4491_s17, 2  ;;  %s3409_s7 = scalar_lea.sflag [#allocation4], %s3408_s5 }
 0x266   : > { %p3878_p2 = pnand %p5705_p11, %p5704_p9 }
 0x268   : > { %p3879_p13 = pneg %p3878_p2 }
 0x26a   : > { %4466 = dma.done.wait (%p3879_p13), %s3409_s7, 8192  }
 0x26b   : > { %4468 = vsyncadd (%p3879_p13), %s3409_s7, 4294959104  ;;  %s20_s17 = sadd.s32 1, %s4491_s17   ;;  %s5706_s12 = smov %s4475_s13 }
 0x26c   : > { %p17_p0 = scmp.ge.s32.totalorder %s20_s17, 4   ;;  %s5707_s13 = smov %s4479_s14 }
 0x26d   : > { %s5708_s14 = smov %s4627_s29  ;;  %s5709_s15 = smov %s4487_s16 }
 0x26e   : > { %s5710_s16 = smov %s5712_s11  ;;  %19 = sbr.rel (!%p17_p0) target bundleno = 7 (0x7), region = 91 }
 0x273   :  { %3414 = vsyncpa [#allocation3], 1 }
 0x274   :  { %3416 = vsyncpa [#allocation3 + $0x1], 1 }
 0x275   :  { %3417 = vsyncpa [#allocation6], 1 }
 0x276   :  { %3418 = vsyncpa [#allocation4], 1 }
 0x277   :  { %3420 = vsyncpa [#allocation4 + $0x1], 1 }

</bundles_post_ra>
